<compile_context>
chip_gen: v7x
topology: tpu7x:2x2x1
jax: 0.10.0
libtpu: 0.0.40
codegen_flags: <defaults>
</compile_context>

<pallas_src>
import jax
import jax.numpy as jnp
from jax import lax
from jax.experimental import pallas as pl
from jax.experimental.pallas import tpu as pltpu

# Problem sizes (small, consistent with the module).
N, C, H, W = 2, 4, 16, 16      # batch, channels (in == out, depthwise), spatial
K = 7                          # large kernel size
KS = 3                         # small kernel size
PAD = K // 2
OFF = (K - KS) // 2            # offset of the 3x3 window inside the 7x7 kernel
HP, WP = H + 2 * PAD, W + 2 * PAD

IN_LANES = WP * N * C          # 22 * 2 * 4 = 176
OUT_LANES = W * N * C          # 16 * 2 * 4 = 128


def decom_lk_kernel(x_ref, w_ref, b_ref, o_ref):
    """Single folded 7x7 depthwise conv + bias over the whole batch.

    x_ref : (HP, WP*N*C)  zero-padded input; lane index q = w*N*C + n*C + c
    w_ref : (K, K, W*N*C) folded depthwise weights, pre-tiled over (w, n)
    b_ref : (1, W*N*C)    folded bias, pre-tiled over (w, n)
    o_ref : (H,  W*N*C)
    """
    # Start the accumulator at the folded bias: the epilogue is then a pure
    # cast + full-width store (no extra VALU pass over the output).
    acc = jnp.broadcast_to(b_ref[...], (H, OUT_LANES)).astype(jnp.float32)
    for kh in range(K):
        # Hoist the kh row slab once; the 7 kw taps below reuse it.
        xs = x_ref[kh:kh + H, :]                 # (H, WP*N*C)
        for kw in range(K):
            off = kw * N * C                     # contiguous lane window per tap
            acc = acc + xs[:, off:off + OUT_LANES] * w_ref[kh, kw, :]
    o_ref[...] = acc.astype(o_ref.dtype)


def decom_large_kernel_conv(x_nchw, wL, wS, scaleL, shiftL, scaleS, shiftS):
    """Wrapper: NCHW in/out; folds branches+BN and builds the lane-dense layout."""
    # ---- Fold the 3 BN'd 7x7 branches and the BN'd 3x3 branch into one conv ----
    w_fold = jnp.einsum('bhwc,bc->hwc', wL, scaleL)               # (K, K, C)
    w_fold = w_fold.at[OFF:OFF + KS, OFF:OFF + KS, :].add(wS * scaleS[0])
    b_fold = shiftL.sum(0) + shiftS[0]                            # (C,)

    # ---- Lane-dense layout: (hp, w*n*c) with c fastest, then n, then w ----
    x = jnp.transpose(x_nchw, (0, 2, 3, 1))                       # NCHW -> NHWC
    x_pad = jnp.pad(x, ((0, 0), (PAD, PAD), (PAD, PAD), (0, 0)))  # (N,HP,WP,C)
    x_flat = jnp.transpose(x_pad, (1, 2, 0, 3)).reshape(HP, IN_LANES)

    # Pre-tile weights / bias across (w, n) so the kernel never re-broadcasts
    # per-channel vectors inside the tap loop (25 KB total: cheap, stays VMEM
    # resident for the single grid step).
    w_tiled = jnp.tile(w_fold, (1, 1, N * W)).astype(jnp.float32)  # (K, K, 128)
    b_tiled = jnp.tile(b_fold, N * W)[None, :].astype(jnp.float32) # (1, 128)

    out_flat = pl.pallas_call(
        decom_lk_kernel,
        out_shape=jax.ShapeDtypeStruct((H, OUT_LANES), x_nchw.dtype),
        grid=(1,),                                                # whole batch resident, one step
        in_specs=[
            pl.BlockSpec((HP, IN_LANES), lambda i: (0, 0)),
            pl.BlockSpec((K, K, OUT_LANES), lambda i: (0, 0, 0)),
            pl.BlockSpec((1, OUT_LANES), lambda i: (0, 0)),
        ],
        out_specs=pl.BlockSpec((H, OUT_LANES), lambda i: (0, 0)),
        compiler_params=pltpu.CompilerParams(
            dimension_semantics=("arbitrary",)),
    )(x_flat, w_tiled, b_tiled)

    # (H, W*N*C) -> (H, W, N, C) -> (N, C, H, W)
    out = out_flat.reshape(H, W, N, C)
    return jnp.transpose(out, (2, 3, 0, 1))


def _reference(x_nchw, wL, wS, scaleL, shiftL, scaleS, shiftS):
    """Pure-JAX reference: per-branch depthwise conv + BN affine (un-folded)."""
    x = jnp.transpose(x_nchw, (0, 2, 3, 1))  # NHWC
    dn = ("NHWC", "HWIO", "NHWC")

    def dwconv(xx, w_hwc, pad):
        k = w_hwc[:, :, None, :]             # (kh, kw, I=1, O=C)
        return lax.conv_general_dilated(
            xx, k, window_strides=(1, 1), padding=[(pad, pad), (pad, pad)],
            dimension_numbers=dn, feature_group_count=C)

    out = jnp.zeros_like(x)
    for b in range(3):
        out = out + dwconv(x, wL[b], PAD) * scaleL[b] + shiftL[b]
    out = out + dwconv(x, wS, KS // 2) * scaleS[0] + shiftS[0]
    return jnp.transpose(out, (0, 3, 1, 2))


if __name__ == "__main__":
    key = jax.random.PRNGKey(0)
    keys = jax.random.split(key, 12)

    # Input (PyTorch NCHW convention).
    x = jax.random.normal(keys[0], (N, C, H, W), jnp.float32)

    # Depthwise conv weights: PyTorch (C,1,kh,kw) -> ours (kh,kw,C).
    wL = 0.1 * jax.random.normal(keys[1], (3, K, K, C), jnp.float32)   # 3 LoRA branches
    wS = 0.1 * jax.random.normal(keys[2], (KS, KS, C), jnp.float32)    # small_conv

    # Deterministic BatchNorm parameters per branch (3 LoRA + 1 small).
    eps = 1e-5
    gammaL = 1.0 + 0.1 * jax.random.normal(keys[3], (3, C), jnp.float32)
    betaL = 0.1 * jax.random.normal(keys[4], (3, C), jnp.float32)
    meanL = 0.1 * jax.random.normal(keys[5], (3, C), jnp.float32)
    varL = jnp.abs(jax.random.normal(keys[6], (3, C), jnp.float32)) + 0.5
    gammaS = 1.0 + 0.1 * jax.random.normal(keys[7], (1, C), jnp.float32)
    betaS = 0.1 * jax.random.normal(keys[8], (1, C), jnp.float32)
    meanS = 0.1 * jax.random.normal(keys[9], (1, C), jnp.float32)
    varS = jnp.abs(jax.random.normal(keys[10], (1, C), jnp.float32)) + 0.5

    # Fold BN into per-channel scale/shift (glue, plain JAX).
    scaleL = gammaL / jnp.sqrt(varL + eps)          # (3, C)
    shiftL = betaL - scaleL * meanL                 # (3, C)
    scaleS = gammaS / jnp.sqrt(varS + eps)          # (1, C)
    shiftS = betaS - scaleS * meanS                 # (1, C)

    out = decom_large_kernel_conv(x, wL, wS, scaleL, shiftL, scaleS, shiftS)
    out = jax.block_until_ready(out)

    ref = _reference(x, wL, wS, scaleL, shiftL, scaleS, shiftS)
    assert out.shape == (N, C, H, W)
    assert jnp.allclose(out, ref, rtol=1e-4, atol=1e-4), "mismatch vs JAX reference"

    print("KERNEL_OK")
</pallas_src>

<mosaic_0001>
module attributes {stable_mosaic.version = 11 : i64} {
  func.func @decom_lk_kernel(%arg0: i32, %arg1: memref<22x176xf32, #tpu.memory_space<vmem>>, %arg2: memref<7x7x128xf32, #tpu.memory_space<vmem>>, %arg3: memref<1x128xf32, #tpu.memory_space<vmem>>, %arg4: memref<16x128xf32, #tpu.memory_space<vmem>>) attributes {dimension_semantics = [#tpu.dimension_semantics<arbitrary>], iteration_bounds = array<i64: 1>, scalar_prefetch = 0 : i64, scratch_operands = 0 : i64, tpu.core_type = #tpu.core_type<tc>, window_params = [{pipeline_mode = #tpu.pipeline_mode<synchronous>, transform_indices = @transform_0, window_bounds = array<i64: 22, 176>}, {pipeline_mode = #tpu.pipeline_mode<synchronous>, transform_indices = @transform_1, window_bounds = array<i64: 7, 7, 128>}, {pipeline_mode = #tpu.pipeline_mode<synchronous>, transform_indices = @transform_2, window_bounds = array<i64: 1, 128>}, {pipeline_mode = #tpu.pipeline_mode<synchronous>, transform_indices = @transform_3, window_bounds = array<i64: 16, 128>}]} {
    %c0 = arith.constant 0 : index
    %c0_0 = arith.constant 0 : index
    %0 = vector.load %arg3[%c0, %c0_0] : memref<1x128xf32, #tpu.memory_space<vmem>>, vector<1x128xf32>
    %1 = vector.shape_cast %0 : vector<1x128xf32> to vector<1x128xf32>
    %2 = vector.broadcast %1 : vector<1x128xf32> to vector<16x128xf32>
    %c0_1 = arith.constant 0 : index
    %c0_2 = arith.constant 0 : index
    %3 = vector.load %arg1[%c0_1, %c0_2] : memref<22x176xf32, #tpu.memory_space<vmem>>, vector<16x176xf32>
    %4 = vector.extract_strided_slice %3 {offsets = [0, 0], sizes = [16, 128], strides = [1, 1]} : vector<16x176xf32> to vector<16x128xf32>
    %c0_3 = arith.constant 0 : index
    %c0_4 = arith.constant 0 : index
    %c0_5 = arith.constant 0 : index
    %5 = vector.load %arg2[%c0_3, %c0_4, %c0_5] : memref<7x7x128xf32, #tpu.memory_space<vmem>>, vector<1x1x128xf32>
    %6 = vector.shape_cast %5 : vector<1x1x128xf32> to vector<128xf32>
    %7 = vector.shape_cast %6 : vector<128xf32> to vector<1x128xf32>
    %8 = vector.broadcast %7 : vector<1x128xf32> to vector<16x128xf32>
    %9 = arith.mulf %4, %8 : vector<16x128xf32>
    %10 = arith.addf %2, %9 : vector<16x128xf32>
    %11 = vector.extract_strided_slice %3 {offsets = [0, 8], sizes = [16, 128], strides = [1, 1]} : vector<16x176xf32> to vector<16x128xf32>
    %c0_6 = arith.constant 0 : index
    %c1 = arith.constant 1 : index
    %c0_7 = arith.constant 0 : index
    %12 = vector.load %arg2[%c0_6, %c1, %c0_7] : memref<7x7x128xf32, #tpu.memory_space<vmem>>, vector<1x1x128xf32>
    %13 = vector.shape_cast %12 : vector<1x1x128xf32> to vector<128xf32>
    %14 = vector.shape_cast %13 : vector<128xf32> to vector<1x128xf32>
    %15 = vector.broadcast %14 : vector<1x128xf32> to vector<16x128xf32>
    %16 = arith.mulf %11, %15 : vector<16x128xf32>
    %17 = arith.addf %10, %16 : vector<16x128xf32>
    %18 = vector.extract_strided_slice %3 {offsets = [0, 16], sizes = [16, 128], strides = [1, 1]} : vector<16x176xf32> to vector<16x128xf32>
    %c0_8 = arith.constant 0 : index
    %c2 = arith.constant 2 : index
    %c0_9 = arith.constant 0 : index
    %19 = vector.load %arg2[%c0_8, %c2, %c0_9] : memref<7x7x128xf32, #tpu.memory_space<vmem>>, vector<1x1x128xf32>
    %20 = vector.shape_cast %19 : vector<1x1x128xf32> to vector<128xf32>
    %21 = vector.shape_cast %20 : vector<128xf32> to vector<1x128xf32>
    %22 = vector.broadcast %21 : vector<1x128xf32> to vector<16x128xf32>
    %23 = arith.mulf %18, %22 : vector<16x128xf32>
    %24 = arith.addf %17, %23 : vector<16x128xf32>
    %25 = vector.extract_strided_slice %3 {offsets = [0, 24], sizes = [16, 128], strides = [1, 1]} : vector<16x176xf32> to vector<16x128xf32>
    %c0_10 = arith.constant 0 : index
    %c3 = arith.constant 3 : index
    %c0_11 = arith.constant 0 : index
    %26 = vector.load %arg2[%c0_10, %c3, %c0_11] : memref<7x7x128xf32, #tpu.memory_space<vmem>>, vector<1x1x128xf32>
    %27 = vector.shape_cast %26 : vector<1x1x128xf32> to vector<128xf32>
    %28 = vector.shape_cast %27 : vector<128xf32> to vector<1x128xf32>
    %29 = vector.broadcast %28 : vector<1x128xf32> to vector<16x128xf32>
    %30 = arith.mulf %25, %29 : vector<16x128xf32>
    %31 = arith.addf %24, %30 : vector<16x128xf32>
    %32 = vector.extract_strided_slice %3 {offsets = [0, 32], sizes = [16, 128], strides = [1, 1]} : vector<16x176xf32> to vector<16x128xf32>
    %c0_12 = arith.constant 0 : index
    %c4 = arith.constant 4 : index
    %c0_13 = arith.constant 0 : index
    %33 = vector.load %arg2[%c0_12, %c4, %c0_13] : memref<7x7x128xf32, #tpu.memory_space<vmem>>, vector<1x1x128xf32>
    %34 = vector.shape_cast %33 : vector<1x1x128xf32> to vector<128xf32>
    %35 = vector.shape_cast %34 : vector<128xf32> to vector<1x128xf32>
    %36 = vector.broadcast %35 : vector<1x128xf32> to vector<16x128xf32>
    %37 = arith.mulf %32, %36 : vector<16x128xf32>
    %38 = arith.addf %31, %37 : vector<16x128xf32>
    %39 = vector.extract_strided_slice %3 {offsets = [0, 40], sizes = [16, 128], strides = [1, 1]} : vector<16x176xf32> to vector<16x128xf32>
    %c0_14 = arith.constant 0 : index
    %c5 = arith.constant 5 : index
    %c0_15 = arith.constant 0 : index
    %40 = vector.load %arg2[%c0_14, %c5, %c0_15] : memref<7x7x128xf32, #tpu.memory_space<vmem>>, vector<1x1x128xf32>
    %41 = vector.shape_cast %40 : vector<1x1x128xf32> to vector<128xf32>
    %42 = vector.shape_cast %41 : vector<128xf32> to vector<1x128xf32>
    %43 = vector.broadcast %42 : vector<1x128xf32> to vector<16x128xf32>
    %44 = arith.mulf %39, %43 : vector<16x128xf32>
    %45 = arith.addf %38, %44 : vector<16x128xf32>
    %46 = vector.extract_strided_slice %3 {offsets = [0, 48], sizes = [16, 128], strides = [1, 1]} : vector<16x176xf32> to vector<16x128xf32>
    %c0_16 = arith.constant 0 : index
    %c6 = arith.constant 6 : index
    %c0_17 = arith.constant 0 : index
    %47 = vector.load %arg2[%c0_16, %c6, %c0_17] : memref<7x7x128xf32, #tpu.memory_space<vmem>>, vector<1x1x128xf32>
    %48 = vector.shape_cast %47 : vector<1x1x128xf32> to vector<128xf32>
    %49 = vector.shape_cast %48 : vector<128xf32> to vector<1x128xf32>
    %50 = vector.broadcast %49 : vector<1x128xf32> to vector<16x128xf32>
    %51 = arith.mulf %46, %50 : vector<16x128xf32>
    %52 = arith.addf %45, %51 : vector<16x128xf32>
    %c1_18 = arith.constant 1 : index
    %c0_19 = arith.constant 0 : index
    %53 = vector.load %arg1[%c1_18, %c0_19] : memref<22x176xf32, #tpu.memory_space<vmem>>, vector<16x176xf32>
    %54 = vector.extract_strided_slice %53 {offsets = [0, 0], sizes = [16, 128], strides = [1, 1]} : vector<16x176xf32> to vector<16x128xf32>
    %c1_20 = arith.constant 1 : index
    %c0_21 = arith.constant 0 : index
    %c0_22 = arith.constant 0 : index
    %55 = vector.load %arg2[%c1_20, %c0_21, %c0_22] : memref<7x7x128xf32, #tpu.memory_space<vmem>>, vector<1x1x128xf32>
    %56 = vector.shape_cast %55 : vector<1x1x128xf32> to vector<128xf32>
    %57 = vector.shape_cast %56 : vector<128xf32> to vector<1x128xf32>
    %58 = vector.broadcast %57 : vector<1x128xf32> to vector<16x128xf32>
    %59 = arith.mulf %54, %58 : vector<16x128xf32>
    %60 = arith.addf %52, %59 : vector<16x128xf32>
    %61 = vector.extract_strided_slice %53 {offsets = [0, 8], sizes = [16, 128], strides = [1, 1]} : vector<16x176xf32> to vector<16x128xf32>
    %c1_23 = arith.constant 1 : index
    %c1_24 = arith.constant 1 : index
    %c0_25 = arith.constant 0 : index
    %62 = vector.load %arg2[%c1_23, %c1_24, %c0_25] : memref<7x7x128xf32, #tpu.memory_space<vmem>>, vector<1x1x128xf32>
    %63 = vector.shape_cast %62 : vector<1x1x128xf32> to vector<128xf32>
    %64 = vector.shape_cast %63 : vector<128xf32> to vector<1x128xf32>
    %65 = vector.broadcast %64 : vector<1x128xf32> to vector<16x128xf32>
    %66 = arith.mulf %61, %65 : vector<16x128xf32>
    %67 = arith.addf %60, %66 : vector<16x128xf32>
    %68 = vector.extract_strided_slice %53 {offsets = [0, 16], sizes = [16, 128], strides = [1, 1]} : vector<16x176xf32> to vector<16x128xf32>
    %c1_26 = arith.constant 1 : index
    %c2_27 = arith.constant 2 : index
    %c0_28 = arith.constant 0 : index
    %69 = vector.load %arg2[%c1_26, %c2_27, %c0_28] : memref<7x7x128xf32, #tpu.memory_space<vmem>>, vector<1x1x128xf32>
    %70 = vector.shape_cast %69 : vector<1x1x128xf32> to vector<128xf32>
    %71 = vector.shape_cast %70 : vector<128xf32> to vector<1x128xf32>
    %72 = vector.broadcast %71 : vector<1x128xf32> to vector<16x128xf32>
    %73 = arith.mulf %68, %72 : vector<16x128xf32>
    %74 = arith.addf %67, %73 : vector<16x128xf32>
    %75 = vector.extract_strided_slice %53 {offsets = [0, 24], sizes = [16, 128], strides = [1, 1]} : vector<16x176xf32> to vector<16x128xf32>
    %c1_29 = arith.constant 1 : index
    %c3_30 = arith.constant 3 : index
    %c0_31 = arith.constant 0 : index
    %76 = vector.load %arg2[%c1_29, %c3_30, %c0_31] : memref<7x7x128xf32, #tpu.memory_space<vmem>>, vector<1x1x128xf32>
    %77 = vector.shape_cast %76 : vector<1x1x128xf32> to vector<128xf32>
    %78 = vector.shape_cast %77 : vector<128xf32> to vector<1x128xf32>
    %79 = vector.broadcast %78 : vector<1x128xf32> to vector<16x128xf32>
    %80 = arith.mulf %75, %79 : vector<16x128xf32>
    %81 = arith.addf %74, %80 : vector<16x128xf32>
    %82 = vector.extract_strided_slice %53 {offsets = [0, 32], sizes = [16, 128], strides = [1, 1]} : vector<16x176xf32> to vector<16x128xf32>
    %c1_32 = arith.constant 1 : index
    %c4_33 = arith.constant 4 : index
    %c0_34 = arith.constant 0 : index
    %83 = vector.load %arg2[%c1_32, %c4_33, %c0_34] : memref<7x7x128xf32, #tpu.memory_space<vmem>>, vector<1x1x128xf32>
    %84 = vector.shape_cast %83 : vector<1x1x128xf32> to vector<128xf32>
    %85 = vector.shape_cast %84 : vector<128xf32> to vector<1x128xf32>
    %86 = vector.broadcast %85 : vector<1x128xf32> to vector<16x128xf32>
    %87 = arith.mulf %82, %86 : vector<16x128xf32>
    %88 = arith.addf %81, %87 : vector<16x128xf32>
    %89 = vector.extract_strided_slice %53 {offsets = [0, 40], sizes = [16, 128], strides = [1, 1]} : vector<16x176xf32> to vector<16x128xf32>
    %c1_35 = arith.constant 1 : index
    %c5_36 = arith.constant 5 : index
    %c0_37 = arith.constant 0 : index
    %90 = vector.load %arg2[%c1_35, %c5_36, %c0_37] : memref<7x7x128xf32, #tpu.memory_space<vmem>>, vector<1x1x128xf32>
    %91 = vector.shape_cast %90 : vector<1x1x128xf32> to vector<128xf32>
    %92 = vector.shape_cast %91 : vector<128xf32> to vector<1x128xf32>
    %93 = vector.broadcast %92 : vector<1x128xf32> to vector<16x128xf32>
    %94 = arith.mulf %89, %93 : vector<16x128xf32>
    %95 = arith.addf %88, %94 : vector<16x128xf32>
    %96 = vector.extract_strided_slice %53 {offsets = [0, 48], sizes = [16, 128], strides = [1, 1]} : vector<16x176xf32> to vector<16x128xf32>
    %c1_38 = arith.constant 1 : index
    %c6_39 = arith.constant 6 : index
    %c0_40 = arith.constant 0 : index
    %97 = vector.load %arg2[%c1_38, %c6_39, %c0_40] : memref<7x7x128xf32, #tpu.memory_space<vmem>>, vector<1x1x128xf32>
    %98 = vector.shape_cast %97 : vector<1x1x128xf32> to vector<128xf32>
    %99 = vector.shape_cast %98 : vector<128xf32> to vector<1x128xf32>
    %100 = vector.broadcast %99 : vector<1x128xf32> to vector<16x128xf32>
    %101 = arith.mulf %96, %100 : vector<16x128xf32>
    %102 = arith.addf %95, %101 : vector<16x128xf32>
    %c2_41 = arith.constant 2 : index
    %c0_42 = arith.constant 0 : index
    %103 = vector.load %arg1[%c2_41, %c0_42] : memref<22x176xf32, #tpu.memory_space<vmem>>, vector<16x176xf32>
    %104 = vector.extract_strided_slice %103 {offsets = [0, 0], sizes = [16, 128], strides = [1, 1]} : vector<16x176xf32> to vector<16x128xf32>
    %c2_43 = arith.constant 2 : index
    %c0_44 = arith.constant 0 : index
    %c0_45 = arith.constant 0 : index
    %105 = vector.load %arg2[%c2_43, %c0_44, %c0_45] : memref<7x7x128xf32, #tpu.memory_space<vmem>>, vector<1x1x128xf32>
    %106 = vector.shape_cast %105 : vector<1x1x128xf32> to vector<128xf32>
    %107 = vector.shape_cast %106 : vector<128xf32> to vector<1x128xf32>
    %108 = vector.broadcast %107 : vector<1x128xf32> to vector<16x128xf32>
    %109 = arith.mulf %104, %108 : vector<16x128xf32>
    %110 = arith.addf %102, %109 : vector<16x128xf32>
    %111 = vector.extract_strided_slice %103 {offsets = [0, 8], sizes = [16, 128], strides = [1, 1]} : vector<16x176xf32> to vector<16x128xf32>
    %c2_46 = arith.constant 2 : index
    %c1_47 = arith.constant 1 : index
    %c0_48 = arith.constant 0 : index
    %112 = vector.load %arg2[%c2_46, %c1_47, %c0_48] : memref<7x7x128xf32, #tpu.memory_space<vmem>>, vector<1x1x128xf32>
    %113 = vector.shape_cast %112 : vector<1x1x128xf32> to vector<128xf32>
    %114 = vector.shape_cast %113 : vector<128xf32> to vector<1x128xf32>
    %115 = vector.broadcast %114 : vector<1x128xf32> to vector<16x128xf32>
    %116 = arith.mulf %111, %115 : vector<16x128xf32>
    %117 = arith.addf %110, %116 : vector<16x128xf32>
    %118 = vector.extract_strided_slice %103 {offsets = [0, 16], sizes = [16, 128], strides = [1, 1]} : vector<16x176xf32> to vector<16x128xf32>
    %c2_49 = arith.constant 2 : index
    %c2_50 = arith.constant 2 : index
    %c0_51 = arith.constant 0 : index
    %119 = vector.load %arg2[%c2_49, %c2_50, %c0_51] : memref<7x7x128xf32, #tpu.memory_space<vmem>>, vector<1x1x128xf32>
    %120 = vector.shape_cast %119 : vector<1x1x128xf32> to vector<128xf32>
    %121 = vector.shape_cast %120 : vector<128xf32> to vector<1x128xf32>
    %122 = vector.broadcast %121 : vector<1x128xf32> to vector<16x128xf32>
    %123 = arith.mulf %118, %122 : vector<16x128xf32>
    %124 = arith.addf %117, %123 : vector<16x128xf32>
    %125 = vector.extract_strided_slice %103 {offsets = [0, 24], sizes = [16, 128], strides = [1, 1]} : vector<16x176xf32> to vector<16x128xf32>
    %c2_52 = arith.constant 2 : index
    %c3_53 = arith.constant 3 : index
    %c0_54 = arith.constant 0 : index
    %126 = vector.load %arg2[%c2_52, %c3_53, %c0_54] : memref<7x7x128xf32, #tpu.memory_space<vmem>>, vector<1x1x128xf32>
    %127 = vector.shape_cast %126 : vector<1x1x128xf32> to vector<128xf32>
    %128 = vector.shape_cast %127 : vector<128xf32> to vector<1x128xf32>
    %129 = vector.broadcast %128 : vector<1x128xf32> to vector<16x128xf32>
    %130 = arith.mulf %125, %129 : vector<16x128xf32>
    %131 = arith.addf %124, %130 : vector<16x128xf32>
    %132 = vector.extract_strided_slice %103 {offsets = [0, 32], sizes = [16, 128], strides = [1, 1]} : vector<16x176xf32> to vector<16x128xf32>
    %c2_55 = arith.constant 2 : index
    %c4_56 = arith.constant 4 : index
    %c0_57 = arith.constant 0 : index
    %133 = vector.load %arg2[%c2_55, %c4_56, %c0_57] : memref<7x7x128xf32, #tpu.memory_space<vmem>>, vector<1x1x128xf32>
    %134 = vector.shape_cast %133 : vector<1x1x128xf32> to vector<128xf32>
    %135 = vector.shape_cast %134 : vector<128xf32> to vector<1x128xf32>
    %136 = vector.broadcast %135 : vector<1x128xf32> to vector<16x128xf32>
    %137 = arith.mulf %132, %136 : vector<16x128xf32>
    %138 = arith.addf %131, %137 : vector<16x128xf32>
    %139 = vector.extract_strided_slice %103 {offsets = [0, 40], sizes = [16, 128], strides = [1, 1]} : vector<16x176xf32> to vector<16x128xf32>
    %c2_58 = arith.constant 2 : index
    %c5_59 = arith.constant 5 : index
    %c0_60 = arith.constant 0 : index
    %140 = vector.load %arg2[%c2_58, %c5_59, %c0_60] : memref<7x7x128xf32, #tpu.memory_space<vmem>>, vector<1x1x128xf32>
    %141 = vector.shape_cast %140 : vector<1x1x128xf32> to vector<128xf32>
    %142 = vector.shape_cast %141 : vector<128xf32> to vector<1x128xf32>
    %143 = vector.broadcast %142 : vector<1x128xf32> to vector<16x128xf32>
    %144 = arith.mulf %139, %143 : vector<16x128xf32>
    %145 = arith.addf %138, %144 : vector<16x128xf32>
    %146 = vector.extract_strided_slice %103 {offsets = [0, 48], sizes = [16, 128], strides = [1, 1]} : vector<16x176xf32> to vector<16x128xf32>
    %c2_61 = arith.constant 2 : index
    %c6_62 = arith.constant 6 : index
    %c0_63 = arith.constant 0 : index
    %147 = vector.load %arg2[%c2_61, %c6_62, %c0_63] : memref<7x7x128xf32, #tpu.memory_space<vmem>>, vector<1x1x128xf32>
    %148 = vector.shape_cast %147 : vector<1x1x128xf32> to vector<128xf32>
    %149 = vector.shape_cast %148 : vector<128xf32> to vector<1x128xf32>
    %150 = vector.broadcast %149 : vector<1x128xf32> to vector<16x128xf32>
    %151 = arith.mulf %146, %150 : vector<16x128xf32>
    %152 = arith.addf %145, %151 : vector<16x128xf32>
    %c3_64 = arith.constant 3 : index
    %c0_65 = arith.constant 0 : index
    %153 = vector.load %arg1[%c3_64, %c0_65] : memref<22x176xf32, #tpu.memory_space<vmem>>, vector<16x176xf32>
    %154 = vector.extract_strided_slice %153 {offsets = [0, 0], sizes = [16, 128], strides = [1, 1]} : vector<16x176xf32> to vector<16x128xf32>
    %c3_66 = arith.constant 3 : index
    %c0_67 = arith.constant 0 : index
    %c0_68 = arith.constant 0 : index
    %155 = vector.load %arg2[%c3_66, %c0_67, %c0_68] : memref<7x7x128xf32, #tpu.memory_space<vmem>>, vector<1x1x128xf32>
    %156 = vector.shape_cast %155 : vector<1x1x128xf32> to vector<128xf32>
    %157 = vector.shape_cast %156 : vector<128xf32> to vector<1x128xf32>
    %158 = vector.broadcast %157 : vector<1x128xf32> to vector<16x128xf32>
    %159 = arith.mulf %154, %158 : vector<16x128xf32>
    %160 = arith.addf %152, %159 : vector<16x128xf32>
    %161 = vector.extract_strided_slice %153 {offsets = [0, 8], sizes = [16, 128], strides = [1, 1]} : vector<16x176xf32> to vector<16x128xf32>
    %c3_69 = arith.constant 3 : index
    %c1_70 = arith.constant 1 : index
    %c0_71 = arith.constant 0 : index
    %162 = vector.load %arg2[%c3_69, %c1_70, %c0_71] : memref<7x7x128xf32, #tpu.memory_space<vmem>>, vector<1x1x128xf32>
    %163 = vector.shape_cast %162 : vector<1x1x128xf32> to vector<128xf32>
    %164 = vector.shape_cast %163 : vector<128xf32> to vector<1x128xf32>
    %165 = vector.broadcast %164 : vector<1x128xf32> to vector<16x128xf32>
    %166 = arith.mulf %161, %165 : vector<16x128xf32>
    %167 = arith.addf %160, %166 : vector<16x128xf32>
    %168 = vector.extract_strided_slice %153 {offsets = [0, 16], sizes = [16, 128], strides = [1, 1]} : vector<16x176xf32> to vector<16x128xf32>
    %c3_72 = arith.constant 3 : index
    %c2_73 = arith.constant 2 : index
    %c0_74 = arith.constant 0 : index
    %169 = vector.load %arg2[%c3_72, %c2_73, %c0_74] : memref<7x7x128xf32, #tpu.memory_space<vmem>>, vector<1x1x128xf32>
    %170 = vector.shape_cast %169 : vector<1x1x128xf32> to vector<128xf32>
    %171 = vector.shape_cast %170 : vector<128xf32> to vector<1x128xf32>
    %172 = vector.broadcast %171 : vector<1x128xf32> to vector<16x128xf32>
    %173 = arith.mulf %168, %172 : vector<16x128xf32>
    %174 = arith.addf %167, %173 : vector<16x128xf32>
    %175 = vector.extract_strided_slice %153 {offsets = [0, 24], sizes = [16, 128], strides = [1, 1]} : vector<16x176xf32> to vector<16x128xf32>
    %c3_75 = arith.constant 3 : index
    %c3_76 = arith.constant 3 : index
    %c0_77 = arith.constant 0 : index
    %176 = vector.load %arg2[%c3_75, %c3_76, %c0_77] : memref<7x7x128xf32, #tpu.memory_space<vmem>>, vector<1x1x128xf32>
    %177 = vector.shape_cast %176 : vector<1x1x128xf32> to vector<128xf32>
    %178 = vector.shape_cast %177 : vector<128xf32> to vector<1x128xf32>
    %179 = vector.broadcast %178 : vector<1x128xf32> to vector<16x128xf32>
    %180 = arith.mulf %175, %179 : vector<16x128xf32>
    %181 = arith.addf %174, %180 : vector<16x128xf32>
    %182 = vector.extract_strided_slice %153 {offsets = [0, 32], sizes = [16, 128], strides = [1, 1]} : vector<16x176xf32> to vector<16x128xf32>
    %c3_78 = arith.constant 3 : index
    %c4_79 = arith.constant 4 : index
    %c0_80 = arith.constant 0 : index
    %183 = vector.load %arg2[%c3_78, %c4_79, %c0_80] : memref<7x7x128xf32, #tpu.memory_space<vmem>>, vector<1x1x128xf32>
    %184 = vector.shape_cast %183 : vector<1x1x128xf32> to vector<128xf32>
    %185 = vector.shape_cast %184 : vector<128xf32> to vector<1x128xf32>
    %186 = vector.broadcast %185 : vector<1x128xf32> to vector<16x128xf32>
    %187 = arith.mulf %182, %186 : vector<16x128xf32>
    %188 = arith.addf %181, %187 : vector<16x128xf32>
    %189 = vector.extract_strided_slice %153 {offsets = [0, 40], sizes = [16, 128], strides = [1, 1]} : vector<16x176xf32> to vector<16x128xf32>
    %c3_81 = arith.constant 3 : index
    %c5_82 = arith.constant 5 : index
    %c0_83 = arith.constant 0 : index
    %190 = vector.load %arg2[%c3_81, %c5_82, %c0_83] : memref<7x7x128xf32, #tpu.memory_space<vmem>>, vector<1x1x128xf32>
    %191 = vector.shape_cast %190 : vector<1x1x128xf32> to vector<128xf32>
    %192 = vector.shape_cast %191 : vector<128xf32> to vector<1x128xf32>
    %193 = vector.broadcast %192 : vector<1x128xf32> to vector<16x128xf32>
    %194 = arith.mulf %189, %193 : vector<16x128xf32>
    %195 = arith.addf %188, %194 : vector<16x128xf32>
    %196 = vector.extract_strided_slice %153 {offsets = [0, 48], sizes = [16, 128], strides = [1, 1]} : vector<16x176xf32> to vector<16x128xf32>
    %c3_84 = arith.constant 3 : index
    %c6_85 = arith.constant 6 : index
    %c0_86 = arith.constant 0 : index
    %197 = vector.load %arg2[%c3_84, %c6_85, %c0_86] : memref<7x7x128xf32, #tpu.memory_space<vmem>>, vector<1x1x128xf32>
    %198 = vector.shape_cast %197 : vector<1x1x128xf32> to vector<128xf32>
    %199 = vector.shape_cast %198 : vector<128xf32> to vector<1x128xf32>
    %200 = vector.broadcast %199 : vector<1x128xf32> to vector<16x128xf32>
    %201 = arith.mulf %196, %200 : vector<16x128xf32>
    %202 = arith.addf %195, %201 : vector<16x128xf32>
    %c4_87 = arith.constant 4 : index
    %c0_88 = arith.constant 0 : index
    %203 = vector.load %arg1[%c4_87, %c0_88] : memref<22x176xf32, #tpu.memory_space<vmem>>, vector<16x176xf32>
    %204 = vector.extract_strided_slice %203 {offsets = [0, 0], sizes = [16, 128], strides = [1, 1]} : vector<16x176xf32> to vector<16x128xf32>
    %c4_89 = arith.constant 4 : index
    %c0_90 = arith.constant 0 : index
    %c0_91 = arith.constant 0 : index
    %205 = vector.load %arg2[%c4_89, %c0_90, %c0_91] : memref<7x7x128xf32, #tpu.memory_space<vmem>>, vector<1x1x128xf32>
    %206 = vector.shape_cast %205 : vector<1x1x128xf32> to vector<128xf32>
    %207 = vector.shape_cast %206 : vector<128xf32> to vector<1x128xf32>
    %208 = vector.broadcast %207 : vector<1x128xf32> to vector<16x128xf32>
    %209 = arith.mulf %204, %208 : vector<16x128xf32>
    %210 = arith.addf %202, %209 : vector<16x128xf32>
    %211 = vector.extract_strided_slice %203 {offsets = [0, 8], sizes = [16, 128], strides = [1, 1]} : vector<16x176xf32> to vector<16x128xf32>
    %c4_92 = arith.constant 4 : index
    %c1_93 = arith.constant 1 : index
    %c0_94 = arith.constant 0 : index
    %212 = vector.load %arg2[%c4_92, %c1_93, %c0_94] : memref<7x7x128xf32, #tpu.memory_space<vmem>>, vector<1x1x128xf32>
    %213 = vector.shape_cast %212 : vector<1x1x128xf32> to vector<128xf32>
    %214 = vector.shape_cast %213 : vector<128xf32> to vector<1x128xf32>
    %215 = vector.broadcast %214 : vector<1x128xf32> to vector<16x128xf32>
    %216 = arith.mulf %211, %215 : vector<16x128xf32>
    %217 = arith.addf %210, %216 : vector<16x128xf32>
    %218 = vector.extract_strided_slice %203 {offsets = [0, 16], sizes = [16, 128], strides = [1, 1]} : vector<16x176xf32> to vector<16x128xf32>
    %c4_95 = arith.constant 4 : index
    %c2_96 = arith.constant 2 : index
    %c0_97 = arith.constant 0 : index
    %219 = vector.load %arg2[%c4_95, %c2_96, %c0_97] : memref<7x7x128xf32, #tpu.memory_space<vmem>>, vector<1x1x128xf32>
    %220 = vector.shape_cast %219 : vector<1x1x128xf32> to vector<128xf32>
    %221 = vector.shape_cast %220 : vector<128xf32> to vector<1x128xf32>
    %222 = vector.broadcast %221 : vector<1x128xf32> to vector<16x128xf32>
    %223 = arith.mulf %218, %222 : vector<16x128xf32>
    %224 = arith.addf %217, %223 : vector<16x128xf32>
    %225 = vector.extract_strided_slice %203 {offsets = [0, 24], sizes = [16, 128], strides = [1, 1]} : vector<16x176xf32> to vector<16x128xf32>
    %c4_98 = arith.constant 4 : index
    %c3_99 = arith.constant 3 : index
    %c0_100 = arith.constant 0 : index
    %226 = vector.load %arg2[%c4_98, %c3_99, %c0_100] : memref<7x7x128xf32, #tpu.memory_space<vmem>>, vector<1x1x128xf32>
    %227 = vector.shape_cast %226 : vector<1x1x128xf32> to vector<128xf32>
    %228 = vector.shape_cast %227 : vector<128xf32> to vector<1x128xf32>
    %229 = vector.broadcast %228 : vector<1x128xf32> to vector<16x128xf32>
    %230 = arith.mulf %225, %229 : vector<16x128xf32>
    %231 = arith.addf %224, %230 : vector<16x128xf32>
    %232 = vector.extract_strided_slice %203 {offsets = [0, 32], sizes = [16, 128], strides = [1, 1]} : vector<16x176xf32> to vector<16x128xf32>
    %c4_101 = arith.constant 4 : index
    %c4_102 = arith.constant 4 : index
    %c0_103 = arith.constant 0 : index
    %233 = vector.load %arg2[%c4_101, %c4_102, %c0_103] : memref<7x7x128xf32, #tpu.memory_space<vmem>>, vector<1x1x128xf32>
    %234 = vector.shape_cast %233 : vector<1x1x128xf32> to vector<128xf32>
    %235 = vector.shape_cast %234 : vector<128xf32> to vector<1x128xf32>
    %236 = vector.broadcast %235 : vector<1x128xf32> to vector<16x128xf32>
    %237 = arith.mulf %232, %236 : vector<16x128xf32>
    %238 = arith.addf %231, %237 : vector<16x128xf32>
    %239 = vector.extract_strided_slice %203 {offsets = [0, 40], sizes = [16, 128], strides = [1, 1]} : vector<16x176xf32> to vector<16x128xf32>
    %c4_104 = arith.constant 4 : index
    %c5_105 = arith.constant 5 : index
    %c0_106 = arith.constant 0 : index
    %240 = vector.load %arg2[%c4_104, %c5_105, %c0_106] : memref<7x7x128xf32, #tpu.memory_space<vmem>>, vector<1x1x128xf32>
    %241 = vector.shape_cast %240 : vector<1x1x128xf32> to vector<128xf32>
    %242 = vector.shape_cast %241 : vector<128xf32> to vector<1x128xf32>
    %243 = vector.broadcast %242 : vector<1x128xf32> to vector<16x128xf32>
    %244 = arith.mulf %239, %243 : vector<16x128xf32>
    %245 = arith.addf %238, %244 : vector<16x128xf32>
    %246 = vector.extract_strided_slice %203 {offsets = [0, 48], sizes = [16, 128], strides = [1, 1]} : vector<16x176xf32> to vector<16x128xf32>
    %c4_107 = arith.constant 4 : index
    %c6_108 = arith.constant 6 : index
    %c0_109 = arith.constant 0 : index
    %247 = vector.load %arg2[%c4_107, %c6_108, %c0_109] : memref<7x7x128xf32, #tpu.memory_space<vmem>>, vector<1x1x128xf32>
    %248 = vector.shape_cast %247 : vector<1x1x128xf32> to vector<128xf32>
    %249 = vector.shape_cast %248 : vector<128xf32> to vector<1x128xf32>
    %250 = vector.broadcast %249 : vector<1x128xf32> to vector<16x128xf32>
    %251 = arith.mulf %246, %250 : vector<16x128xf32>
    %252 = arith.addf %245, %251 : vector<16x128xf32>
    %c5_110 = arith.constant 5 : index
    %c0_111 = arith.constant 0 : index
    %253 = vector.load %arg1[%c5_110, %c0_111] : memref<22x176xf32, #tpu.memory_space<vmem>>, vector<16x176xf32>
    %254 = vector.extract_strided_slice %253 {offsets = [0, 0], sizes = [16, 128], strides = [1, 1]} : vector<16x176xf32> to vector<16x128xf32>
    %c5_112 = arith.constant 5 : index
    %c0_113 = arith.constant 0 : index
    %c0_114 = arith.constant 0 : index
    %255 = vector.load %arg2[%c5_112, %c0_113, %c0_114] : memref<7x7x128xf32, #tpu.memory_space<vmem>>, vector<1x1x128xf32>
    %256 = vector.shape_cast %255 : vector<1x1x128xf32> to vector<128xf32>
    %257 = vector.shape_cast %256 : vector<128xf32> to vector<1x128xf32>
    %258 = vector.broadcast %257 : vector<1x128xf32> to vector<16x128xf32>
    %259 = arith.mulf %254, %258 : vector<16x128xf32>
    %260 = arith.addf %252, %259 : vector<16x128xf32>
    %261 = vector.extract_strided_slice %253 {offsets = [0, 8], sizes = [16, 128], strides = [1, 1]} : vector<16x176xf32> to vector<16x128xf32>
    %c5_115 = arith.constant 5 : index
    %c1_116 = arith.constant 1 : index
    %c0_117 = arith.constant 0 : index
    %262 = vector.load %arg2[%c5_115, %c1_116, %c0_117] : memref<7x7x128xf32, #tpu.memory_space<vmem>>, vector<1x1x128xf32>
    %263 = vector.shape_cast %262 : vector<1x1x128xf32> to vector<128xf32>
    %264 = vector.shape_cast %263 : vector<128xf32> to vector<1x128xf32>
    %265 = vector.broadcast %264 : vector<1x128xf32> to vector<16x128xf32>
    %266 = arith.mulf %261, %265 : vector<16x128xf32>
    %267 = arith.addf %260, %266 : vector<16x128xf32>
    %268 = vector.extract_strided_slice %253 {offsets = [0, 16], sizes = [16, 128], strides = [1, 1]} : vector<16x176xf32> to vector<16x128xf32>
    %c5_118 = arith.constant 5 : index
    %c2_119 = arith.constant 2 : index
    %c0_120 = arith.constant 0 : index
    %269 = vector.load %arg2[%c5_118, %c2_119, %c0_120] : memref<7x7x128xf32, #tpu.memory_space<vmem>>, vector<1x1x128xf32>
    %270 = vector.shape_cast %269 : vector<1x1x128xf32> to vector<128xf32>
    %271 = vector.shape_cast %270 : vector<128xf32> to vector<1x128xf32>
    %272 = vector.broadcast %271 : vector<1x128xf32> to vector<16x128xf32>
    %273 = arith.mulf %268, %272 : vector<16x128xf32>
    %274 = arith.addf %267, %273 : vector<16x128xf32>
    %275 = vector.extract_strided_slice %253 {offsets = [0, 24], sizes = [16, 128], strides = [1, 1]} : vector<16x176xf32> to vector<16x128xf32>
    %c5_121 = arith.constant 5 : index
    %c3_122 = arith.constant 3 : index
    %c0_123 = arith.constant 0 : index
    %276 = vector.load %arg2[%c5_121, %c3_122, %c0_123] : memref<7x7x128xf32, #tpu.memory_space<vmem>>, vector<1x1x128xf32>
    %277 = vector.shape_cast %276 : vector<1x1x128xf32> to vector<128xf32>
    %278 = vector.shape_cast %277 : vector<128xf32> to vector<1x128xf32>
    %279 = vector.broadcast %278 : vector<1x128xf32> to vector<16x128xf32>
    %280 = arith.mulf %275, %279 : vector<16x128xf32>
    %281 = arith.addf %274, %280 : vector<16x128xf32>
    %282 = vector.extract_strided_slice %253 {offsets = [0, 32], sizes = [16, 128], strides = [1, 1]} : vector<16x176xf32> to vector<16x128xf32>
    %c5_124 = arith.constant 5 : index
    %c4_125 = arith.constant 4 : index
    %c0_126 = arith.constant 0 : index
    %283 = vector.load %arg2[%c5_124, %c4_125, %c0_126] : memref<7x7x128xf32, #tpu.memory_space<vmem>>, vector<1x1x128xf32>
    %284 = vector.shape_cast %283 : vector<1x1x128xf32> to vector<128xf32>
    %285 = vector.shape_cast %284 : vector<128xf32> to vector<1x128xf32>
    %286 = vector.broadcast %285 : vector<1x128xf32> to vector<16x128xf32>
    %287 = arith.mulf %282, %286 : vector<16x128xf32>
    %288 = arith.addf %281, %287 : vector<16x128xf32>
    %289 = vector.extract_strided_slice %253 {offsets = [0, 40], sizes = [16, 128], strides = [1, 1]} : vector<16x176xf32> to vector<16x128xf32>
    %c5_127 = arith.constant 5 : index
    %c5_128 = arith.constant 5 : index
    %c0_129 = arith.constant 0 : index
    %290 = vector.load %arg2[%c5_127, %c5_128, %c0_129] : memref<7x7x128xf32, #tpu.memory_space<vmem>>, vector<1x1x128xf32>
    %291 = vector.shape_cast %290 : vector<1x1x128xf32> to vector<128xf32>
    %292 = vector.shape_cast %291 : vector<128xf32> to vector<1x128xf32>
    %293 = vector.broadcast %292 : vector<1x128xf32> to vector<16x128xf32>
    %294 = arith.mulf %289, %293 : vector<16x128xf32>
    %295 = arith.addf %288, %294 : vector<16x128xf32>
    %296 = vector.extract_strided_slice %253 {offsets = [0, 48], sizes = [16, 128], strides = [1, 1]} : vector<16x176xf32> to vector<16x128xf32>
    %c5_130 = arith.constant 5 : index
    %c6_131 = arith.constant 6 : index
    %c0_132 = arith.constant 0 : index
    %297 = vector.load %arg2[%c5_130, %c6_131, %c0_132] : memref<7x7x128xf32, #tpu.memory_space<vmem>>, vector<1x1x128xf32>
    %298 = vector.shape_cast %297 : vector<1x1x128xf32> to vector<128xf32>
    %299 = vector.shape_cast %298 : vector<128xf32> to vector<1x128xf32>
    %300 = vector.broadcast %299 : vector<1x128xf32> to vector<16x128xf32>
    %301 = arith.mulf %296, %300 : vector<16x128xf32>
    %302 = arith.addf %295, %301 : vector<16x128xf32>
    %c6_133 = arith.constant 6 : index
    %c0_134 = arith.constant 0 : index
    %303 = vector.load %arg1[%c6_133, %c0_134] : memref<22x176xf32, #tpu.memory_space<vmem>>, vector<16x176xf32>
    %304 = vector.extract_strided_slice %303 {offsets = [0, 0], sizes = [16, 128], strides = [1, 1]} : vector<16x176xf32> to vector<16x128xf32>
    %c6_135 = arith.constant 6 : index
    %c0_136 = arith.constant 0 : index
    %c0_137 = arith.constant 0 : index
    %305 = vector.load %arg2[%c6_135, %c0_136, %c0_137] : memref<7x7x128xf32, #tpu.memory_space<vmem>>, vector<1x1x128xf32>
    %306 = vector.shape_cast %305 : vector<1x1x128xf32> to vector<128xf32>
    %307 = vector.shape_cast %306 : vector<128xf32> to vector<1x128xf32>
    %308 = vector.broadcast %307 : vector<1x128xf32> to vector<16x128xf32>
    %309 = arith.mulf %304, %308 : vector<16x128xf32>
    %310 = arith.addf %302, %309 : vector<16x128xf32>
    %311 = vector.extract_strided_slice %303 {offsets = [0, 8], sizes = [16, 128], strides = [1, 1]} : vector<16x176xf32> to vector<16x128xf32>
    %c6_138 = arith.constant 6 : index
    %c1_139 = arith.constant 1 : index
    %c0_140 = arith.constant 0 : index
    %312 = vector.load %arg2[%c6_138, %c1_139, %c0_140] : memref<7x7x128xf32, #tpu.memory_space<vmem>>, vector<1x1x128xf32>
    %313 = vector.shape_cast %312 : vector<1x1x128xf32> to vector<128xf32>
    %314 = vector.shape_cast %313 : vector<128xf32> to vector<1x128xf32>
    %315 = vector.broadcast %314 : vector<1x128xf32> to vector<16x128xf32>
    %316 = arith.mulf %311, %315 : vector<16x128xf32>
    %317 = arith.addf %310, %316 : vector<16x128xf32>
    %318 = vector.extract_strided_slice %303 {offsets = [0, 16], sizes = [16, 128], strides = [1, 1]} : vector<16x176xf32> to vector<16x128xf32>
    %c6_141 = arith.constant 6 : index
    %c2_142 = arith.constant 2 : index
    %c0_143 = arith.constant 0 : index
    %319 = vector.load %arg2[%c6_141, %c2_142, %c0_143] : memref<7x7x128xf32, #tpu.memory_space<vmem>>, vector<1x1x128xf32>
    %320 = vector.shape_cast %319 : vector<1x1x128xf32> to vector<128xf32>
    %321 = vector.shape_cast %320 : vector<128xf32> to vector<1x128xf32>
    %322 = vector.broadcast %321 : vector<1x128xf32> to vector<16x128xf32>
    %323 = arith.mulf %318, %322 : vector<16x128xf32>
    %324 = arith.addf %317, %323 : vector<16x128xf32>
    %325 = vector.extract_strided_slice %303 {offsets = [0, 24], sizes = [16, 128], strides = [1, 1]} : vector<16x176xf32> to vector<16x128xf32>
    %c6_144 = arith.constant 6 : index
    %c3_145 = arith.constant 3 : index
    %c0_146 = arith.constant 0 : index
    %326 = vector.load %arg2[%c6_144, %c3_145, %c0_146] : memref<7x7x128xf32, #tpu.memory_space<vmem>>, vector<1x1x128xf32>
    %327 = vector.shape_cast %326 : vector<1x1x128xf32> to vector<128xf32>
    %328 = vector.shape_cast %327 : vector<128xf32> to vector<1x128xf32>
    %329 = vector.broadcast %328 : vector<1x128xf32> to vector<16x128xf32>
    %330 = arith.mulf %325, %329 : vector<16x128xf32>
    %331 = arith.addf %324, %330 : vector<16x128xf32>
    %332 = vector.extract_strided_slice %303 {offsets = [0, 32], sizes = [16, 128], strides = [1, 1]} : vector<16x176xf32> to vector<16x128xf32>
    %c6_147 = arith.constant 6 : index
    %c4_148 = arith.constant 4 : index
    %c0_149 = arith.constant 0 : index
    %333 = vector.load %arg2[%c6_147, %c4_148, %c0_149] : memref<7x7x128xf32, #tpu.memory_space<vmem>>, vector<1x1x128xf32>
    %334 = vector.shape_cast %333 : vector<1x1x128xf32> to vector<128xf32>
    %335 = vector.shape_cast %334 : vector<128xf32> to vector<1x128xf32>
    %336 = vector.broadcast %335 : vector<1x128xf32> to vector<16x128xf32>
    %337 = arith.mulf %332, %336 : vector<16x128xf32>
    %338 = arith.addf %331, %337 : vector<16x128xf32>
    %339 = vector.extract_strided_slice %303 {offsets = [0, 40], sizes = [16, 128], strides = [1, 1]} : vector<16x176xf32> to vector<16x128xf32>
    %c6_150 = arith.constant 6 : index
    %c5_151 = arith.constant 5 : index
    %c0_152 = arith.constant 0 : index
    %340 = vector.load %arg2[%c6_150, %c5_151, %c0_152] : memref<7x7x128xf32, #tpu.memory_space<vmem>>, vector<1x1x128xf32>
    %341 = vector.shape_cast %340 : vector<1x1x128xf32> to vector<128xf32>
    %342 = vector.shape_cast %341 : vector<128xf32> to vector<1x128xf32>
    %343 = vector.broadcast %342 : vector<1x128xf32> to vector<16x128xf32>
    %344 = arith.mulf %339, %343 : vector<16x128xf32>
    %345 = arith.addf %338, %344 : vector<16x128xf32>
    %346 = vector.extract_strided_slice %303 {offsets = [0, 48], sizes = [16, 128], strides = [1, 1]} : vector<16x176xf32> to vector<16x128xf32>
    %c6_153 = arith.constant 6 : index
    %c6_154 = arith.constant 6 : index
    %c0_155 = arith.constant 0 : index
    %347 = vector.load %arg2[%c6_153, %c6_154, %c0_155] : memref<7x7x128xf32, #tpu.memory_space<vmem>>, vector<1x1x128xf32>
    %348 = vector.shape_cast %347 : vector<1x1x128xf32> to vector<128xf32>
    %349 = vector.shape_cast %348 : vector<128xf32> to vector<1x128xf32>
    %350 = vector.broadcast %349 : vector<1x128xf32> to vector<16x128xf32>
    %351 = arith.mulf %346, %350 : vector<16x128xf32>
    %352 = arith.addf %345, %351 : vector<16x128xf32>
    %c0_156 = arith.constant 0 : index
    %c0_157 = arith.constant 0 : index
    %353 = vector.load %arg4[%c0_156, %c0_157] : memref<16x128xf32, #tpu.memory_space<vmem>>, vector<16x128xf32>
    tpu.vector_store %arg4[%c0_156, %c0_157], %352 {strides = array<i32>} : memref<16x128xf32, #tpu.memory_space<vmem>>, vector<16x128xf32>,
    return
  }
  func.func @transform_0(%arg0: i32) -> (i32, i32) {
    %c0_i32 = arith.constant 0 : i32
    %c0_i32_0 = arith.constant 0 : i32
    %c0_i32_1 = arith.constant 0 : i32
    return %c0_i32, %c0_i32_0 : i32, i32
  }
  func.func @transform_1(%arg0: i32) -> (i32, i32, i32) {
    %c0_i32 = arith.constant 0 : i32
    %c0_i32_0 = arith.constant 0 : i32
    %c0_i32_1 = arith.constant 0 : i32
    %c0_i32_2 = arith.constant 0 : i32
    return %c0_i32, %c0_i32_0, %c0_i32_1 : i32, i32, i32
  }
  func.func @transform_2(%arg0: i32) -> (i32, i32) {
    %c0_i32 = arith.constant 0 : i32
    %c0_i32_0 = arith.constant 0 : i32
    %c0_i32_1 = arith.constant 0 : i32
    return %c0_i32, %c0_i32_0 : i32, i32
  }
  func.func @transform_3(%arg0: i32) -> (i32, i32) {
    %c0_i32 = arith.constant 0 : i32
    %c0_i32_0 = arith.constant 0 : i32
    %c0_i32_1 = arith.constant 0 : i32
    return %c0_i32, %c0_i32_0 : i32, i32
  }
}

</mosaic_0001>

<bundles_post_ra>
// kernel: tpu_custom_call.1
= control target key start
LH: loop header
LB: loop body
LE: loop exit
PB: predicated region body
PF: predicated region fallthrough
CT: control target
= control target key end

     0   :  { %8 = vsyncpa [#allocation3], 0  ;;  %s3394_s0 = inlined_call_operand.hbm [shape: f32[22,176], index: 0, kind: input, shape index: {}]   ;;  %s3395_s1 = inlined_call_operand.hbm [shape: f32[7,7,128], index: 1, kind: input, shape index: {}]   ;;  %s3396_s2 = inlined_call_operand.vmem [shape: f32[1,128], index: 2, kind: input, shape index: {}]   ;;  %s3397_s3 = inlined_call_operand.hbm [shape: f32[16,128], index: 3, kind: output, shape index: {}]  }
   0x1   :  { %9 = vsyncpa [#allocation6], 0 }
   0x2   :  { %10 = vsyncpa [#allocation4], 0  ;;  %s2194_s12 = smov [#allocation2]   ;;  %s2122_s16 = scalar_lea.hbm %s3394_s0, 768 }
   0x3   :  { %s16_s13 = sshll.u32 %s2194_s12, 4  ;;  %p2123_p0 = scmp.ne.s32.totalorder %s3394_s0, %s2122_s16  ;;  %s17_s13 = int_to_ptr.vmem [resolvable:$true] %s16_s13 }
   0x4   :  { %p2126_p1 = scmp.lt.u32.totalorder %s2122_s16, %s3394_s0 }
   0x6   :  { %p2128_p2 = pnand %p2126_p1, %p2123_p0 }
   0x8   :  { %2131 = shalt.err (!%p2128_p2)
}
   0x9   :  { %s2132_s21 = scalar_lea.vmem %s17_s13, 768  ;;  %p2137_p4 = scmp.lt.s32.totalorder %s17_s13, %s17_s13 }
   0xa   :  { %p2133_p3 = scmp.ne.s32.totalorder %s17_s13, %s2132_s21  ;;  %p2138_p5 = scmp.lt.s32.totalorder %s2132_s21, %s2132_s21 }
   0xc   :  { %p2139_p6 = por %p2138_p5, %p2137_p4 }
   0xe   :  { %p2140_p7 = pnand %p2139_p6, %p2133_p3 }
  0x10   :  { %2143 = shalt.err (!%p2140_p7)
}
  0x11   :  { %s2195_s22 = smov 256   ;;  %s2196_s23 = smov 16  }
  0x12   :  { %22 = dma.hbm_to_vmem [thread:$0]  %s3394_s0, 768, %s17_s13, [#allocation3], %s2195_s22, %s2195_s22, %s2196_s23  }
  0x13   :  { %s2197_s26 = smov [#allocation5]   ;;  %s2144_s30 = scalar_lea.hbm %s3395_s1, 896 }
  0x14   :  { %s28_s27 = sshll.u32 %s2197_s26, 4  ;;  %p2145_p8 = scmp.ne.s32.totalorder %s3395_s1, %s2144_s30  ;;  %s29_s27 = int_to_ptr.vmem [resolvable:$true] %s28_s27 }
  0x15   :  { %p2148_p9 = scmp.lt.u32.totalorder %s2144_s30, %s3395_s1 }
  0x17   :  { %p2150_p10 = pnand %p2148_p9, %p2145_p8 }
  0x19   :  { %2153 = shalt.err (!%p2150_p10)
}
  0x1a   :  { %s2154_s8 = scalar_lea.vmem %s29_s27, 896  ;;  %p2159_p12 = scmp.lt.s32.totalorder %s29_s27, %s29_s27 }
  0x1b   :  { %p2155_p11 = scmp.ne.s32.totalorder %s29_s27, %s2154_s8  ;;  %p2160_p13 = scmp.lt.s32.totalorder %s2154_s8, %s2154_s8 }
  0x1d   :  { %p2161_p0 = por %p2160_p13, %p2159_p12 }
  0x1f   :  { %p2162_p1 = pnand %p2161_p0, %p2155_p11 }
  0x21   :  { %2165 = shalt.err (!%p2162_p1)
}
  0x22   :  { %s2198_s0 = smov 128   ;;  %s2199_s9 = smov 8  }
  0x23   :  { %34 = dma.hbm_to_vmem [thread:$0]  %s3395_s1, 896, %s29_s27, [#allocation6], %s2198_s0, %s2198_s0, %s2199_s9  }
  0x24   :  { %2188 = dma.done.wait [#allocation3], 768  }
  0x25   :  { %2189 = vsyncadd [#allocation3], 4294966528 }
  0x26   :  { %2190 = dma.done.wait [#allocation6], 896  }
  0x27   :  { %2191 = vsyncadd [#allocation6], 4294966400  ;;  %v2053_v0 = vld [vmem:[#allocation5 + $0x1] ss:$0 sm:$0xff]  ;;  %v2054_v1 = vld [vmem:[#allocation5 + $0x2] ss:$0 sm:$0xff] }
  0x28   :  { %69 = vrot.lane.b32.xlu0 %v2053_v0, %s2199_s9  ;;  %101 = vrot.lane.b32.xlu1 %v2054_v1, %s2196_s23  ;;  %v2055_v2 = vld [vmem:[#allocation5 + $0x3] ss:$0 sm:$0xff]  ;;  %v2056_v3 = vld [vmem:[#allocation5 + $0x4] ss:$0 sm:$0xff]  ;;  %s2200_s12 = smov 24   ;;  %s2201_s13 = smov 32  }
  0x29   :  { %v2057_v4 = vld [vmem:[#allocation5 + $0x5] ss:$0 sm:$0xff]  ;;  %v2058_v5 = vld [vmem:[#allocation5 + $0x6] ss:$0 sm:$0xff]  ;;  %s2202_s1 = smov 40   ;;  %s2203_s14 = smov 48  }
  0x2a   :  { %v2060_v6 = vld [vmem:[#allocation5 + $0x9] ss:$0 sm:$0xff]  ;;  %v2061_v7 = vld [vmem:[#allocation5 + $0xa] ss:$0 sm:$0xff]  ;;  %v2062_v8 = vld [vmem:[#allocation5 + $0xb] ss:$0 sm:$0xff] }
  0x2b   :  { %v2063_v9 = vld [vmem:[#allocation5 + $0xc] ss:$0 sm:$0xff]  ;;  %v2064_v10 = vld [vmem:[#allocation5 + $0xd] ss:$0 sm:$0xff]  ;;  %v2065_v11 = vld [vmem:[#allocation5 + $0xe] ss:$0 sm:$0xff] }
  0x2c   :  { %133 = vrot.lane.b32.xlu0 %v2055_v2, %s2200_s12  ;;  %165 = vrot.lane.b32.xlu1 %v2056_v3, %s2201_s13  ;;  %v2067_v12 = vld [vmem:[#allocation5 + $0x11] ss:$0 sm:$0xff]  ;;  %v2068_v13 = vld [vmem:[#allocation5 + $0x12] ss:$0 sm:$0xff]  ;;  %v51_v14 = vld [vmem:[#allocation2 + $0x8] sm:$0xff]  ;;  %s2204_s15 = smov 120  }
  0x2d   :  { %v2273_v15 = vld [vmem:[#allocation2] sm:$0xff]  ;;  %v2276_v19 = vld [vmem:[#allocation2 + $0x10] sm:$0xff]  ;;  %v2278_v20 = vld [vmem:[#allocation2 + $0x18] sm:$0xff]  ;;  %s2205_s16 = smov 112   ;;  %s2206_s17 = smov 104   ;;  %vm271_vm0 = vcmask 1046528  }
  0x2e   :  { %s2207_s18 = smov 96   ;;  %s2208_s19 = smov 88   ;;  %v2310_v43 = vld [vmem:[#allocation2] sm:$0xfe]  ;;  %v2314_v46 = vld [vmem:[#allocation2 + $0x8] sm:$0xfe] }
  0x2f   :  { %v2059_v53 = vld [vmem:[#allocation5 + $0x8] ss:$0 sm:$0xff]  ;;  %s2209_s20 = smov 80   ;;  %v2325_v55 = vld [vmem:[#allocation2 + $0x20] sm:$0x1]  ;;  %vm567_vm1 = vcmask 1045504  }
  0x30   :  { %197 = vrot.lane.b32.xlu0 %v2057_v4, %s2202_s1  ;;  %229 = vrot.lane.b32.xlu1 %v2058_v5, %s2203_s14  ;;  %v2327_v56 = vld [vmem:[#allocation2 + $0x28] sm:$0x1]  ;;  %v265_v61 = vmul.f32 %v2059_v53, %v2310_v43  ;;  %v266_v0 = vmul.f32 %v2059_v53, %v2276_v19  ;;  %v267_v1 = vmul.f32 %v2059_v53, %v2325_v55  ;;  %vm88_vm2 = vcmask 982016  }
  0x31   :  { %vm120_vm3 = vcmask 916480   ;;  %vm152_vm4 = vcmask 850944   ;;  %vm184_vm5 = vcmask 785408   ;;  %vm216_vm6 = vcmask 719872  }
  0x32   :  { %v272_v4 = vrot.slane %v265_v61, 1  ;;  %vm248_vm7 = vcmask 654336   ;;  %vm863_vm8 = vcmask 1044480   ;;  %vm1159_vm9 = vcmask 1043456  }
  0x33   :  { %vm1455_vm10 = vcmask 1042432   ;;  %vm1751_vm11 = vcmask 1041408  }
  0x34   :  { %287 = vrot.lane.b32.xlu0 %v2060_v6, %s2199_s9  ;;  %332 = vrot.lane.b32.xlu1 %v2061_v7, %s2196_s23  ;;  %v273_v7 = vrot.slane %v266_v0, 1 }
  0x38   :  { %377 = vrot.lane.b32.xlu0 %v2062_v8, %s2200_s12  ;;  %422 = vrot.lane.b32.xlu1 %v2063_v9, %s2201_s13  ;;  %v275_v8 = vrot.slane %v267_v1, 1 }
  0x3c   :  { %467 = vrot.lane.b32.xlu0 %v2064_v10, %s2202_s1  ;;  %512 = vrot.lane.b32.xlu1 %v2065_v11, %s2203_s14 }
  0x40   :  { %583 = vrot.lane.b32.xlu0 %v2067_v12, %s2199_s9  ;;  %628 = vrot.lane.b32.xlu1 %v2068_v13, %s2196_s23  ;;  %v2345_v13 = vsel %vm271_vm0, %v272_v4, %v273_v7 }
  0x9a   :  { %v70_v16 = vpop.permute.xlu0 %69  ;;  %v102_v21 = vpop.permute.xlu1 %101 }
  0x9b   :  { %v73_v17 = vmul.f32 %v70_v16, %v51_v14  ;;  %v72_v18 = vmul.f32 %v70_v16, %v2273_v15  ;;  %v74_v22 = vmul.f32 %v70_v16, %v2276_v19  ;;  %v75_v23 = vmul.f32 %v70_v16, %v2278_v20 }
  0x9c   :  { %v105_v24 = vmul.f32 %v102_v21, %v51_v14  ;;  %v104_v25 = vmul.f32 %v102_v21, %v2273_v15  ;;  %v107_v27 = vmul.f32 %v102_v21, %v2278_v20  ;;  %v106_v28 = vmul.f32 %v102_v21, %v2276_v19 }
  0x9d   :  { %82 = vrot.lane.b32.xlu1 %v73_v17, %s2204_s15  ;;  %80 = vrot.lane.b32.xlu0 %v72_v18, %s2204_s15 }
  0x9e   :  { %v134_v26 = vpop.permute.xlu0 %133  ;;  %v166_v31 = vpop.permute.xlu1 %165 }
  0x9f   :  { %v136_v29 = vmul.f32 %v134_v26, %v2273_v15  ;;  %v137_v30 = vmul.f32 %v134_v26, %v51_v14  ;;  %v138_v32 = vmul.f32 %v134_v26, %v2276_v19  ;;  %v139_v33 = vmul.f32 %v134_v26, %v2278_v20 }
  0xa0   :  { %v169_v34 = vmul.f32 %v166_v31, %v51_v14  ;;  %v168_v35 = vmul.f32 %v166_v31, %v2273_v15  ;;  %v171_v37 = vmul.f32 %v166_v31, %v2278_v20  ;;  %v170_v38 = vmul.f32 %v166_v31, %v2276_v19 }
  0xa1   :  { %84 = vrot.lane.b32.xlu1 %v74_v22, %s2204_s15  ;;  %86 = vrot.lane.b32.xlu0 %v75_v23, %s2204_s15 }
  0xa2   :  { %v198_v36 = vpop.permute.xlu0 %197  ;;  %v230_v41 = vpop.permute.xlu1 %229 }
  0xa3   :  { %v200_v39 = vmul.f32 %v198_v36, %v2273_v15  ;;  %v201_v40 = vmul.f32 %v198_v36, %v51_v14  ;;  %v202_v44 = vmul.f32 %v198_v36, %v2276_v19  ;;  %v203_v45 = vmul.f32 %v198_v36, %v2278_v20 }
  0xa4   :  { %v233_v47 = vmul.f32 %v230_v41, %v51_v14  ;;  %v232_v48 = vmul.f32 %v230_v41, %v2273_v15  ;;  %v235_v62 = vmul.f32 %v230_v41, %v2278_v20  ;;  %v234_v63 = vmul.f32 %v230_v41, %v2276_v19 }
  0xa5   :  { %114 = vrot.lane.b32.xlu1 %v105_v24, %s2205_s16  ;;  %112 = vrot.lane.b32.xlu0 %v104_v25, %s2205_s16  ;;  %v2348_v14 = vsel %vm271_vm0, %v273_v7, %v275_v8 }
  0xa6   :  { %v288_v42 = vpop.permute.xlu0 %287  ;;  %v333_v60 = vpop.permute.xlu1 %332 }
  0xa7   :  { %v290_v49 = vmul.f32 %v288_v42, %v2310_v43  ;;  %v292_v50 = vmul.f32 %v288_v42, %v2276_v19  ;;  %v291_v51 = vmul.f32 %v288_v42, %v2314_v46  ;;  %v293_v52 = vmul.f32 %v288_v42, %v2278_v20 }
  0xa8   :  { %v294_v2 = vmul.f32 %v288_v42, %v2325_v55  ;;  %v295_v3 = vmul.f32 %v288_v42, %v2327_v56  ;;  %v336_v5 = vmul.f32 %v333_v60, %v2314_v46  ;;  %v338_v6 = vmul.f32 %v333_v60, %v2278_v20 }
  0xa9   :  { %118 = vrot.lane.b32.xlu1 %v107_v27, %s2205_s16  ;;  %116 = vrot.lane.b32.xlu0 %v106_v28, %s2205_s16  ;;  %v302_v54 = vrot.slane %v290_v49, 1  ;;  %v303_v57 = vrot.slane %v292_v50, 1  ;;  %v305_v58 = vrot.slane %v291_v51, 1  ;;  %v306_v59 = vrot.slane %v293_v52, 1 }
  0xaa   :  { %v335_v11 = vmul.f32 %v333_v60, %v2310_v43  ;;  %v337_v12 = vmul.f32 %v333_v60, %v2276_v19  ;;  %v308_v16 = vrot.slane %v294_v2, 1  ;;  %v310_v17 = vrot.slane %v295_v3, 1  ;;  %v378_v24 = vpop.permute.xlu0 %377  ;;  %v423_v41 = vpop.permute.xlu1 %422 }
  0xab   :  { %v304_v9 = vsel %vm271_vm0, %v302_v54, %v303_v57  ;;  %v307_v10 = vsel %vm271_vm0, %v305_v58, %v306_v59  ;;  %v350_v18 = vrot.slane %v336_v5, 1  ;;  %v351_v21 = vrot.slane %v338_v6, 1 }
  0xac   :  { %v347_v22 = vrot.slane %v335_v11, 1  ;;  %v348_v23 = vrot.slane %v337_v12, 1  ;;  %v309_v25 = vsel %vm271_vm0, %v303_v57, %v308_v16  ;;  %v311_v26 = vsel %vm271_vm0, %v306_v59, %v310_v17 }
  0xad   :  { %144 = vrot.lane.b32.xlu1 %v136_v29, %s2206_s17  ;;  %146 = vrot.lane.b32.xlu0 %v137_v30, %s2206_s17  ;;  %v340_v27 = vmul.f32 %v333_v60, %v2327_v56  ;;  %v339_v28 = vmul.f32 %v333_v60, %v2325_v55  ;;  %v380_v29 = vmul.f32 %v378_v24, %v2310_v43 }
  0xae   :  { %v382_v30 = vmul.f32 %v378_v24, %v2276_v19  ;;  %v352_v31 = vsel %vm271_vm0, %v350_v18, %v351_v21  ;;  %v426_v49 = vmul.f32 %v423_v41, %v2314_v46  ;;  %v428_v51 = vmul.f32 %v423_v41, %v2278_v20  ;;  %v513_v18 = vpop.permute.xlu1 %512 }
  0xaf   :  { %v353_v36 = vrot.slane %v339_v28, 1  ;;  %v425_v52 = vmul.f32 %v423_v41, %v2310_v43  ;;  %v427_v53 = vmul.f32 %v423_v41, %v2276_v19  ;;  %v430_v1 = vmul.f32 %v423_v41, %v2327_v56 }
  0xb0   :  { %v440_v58 = vrot.slane %v426_v49, 1  ;;  %v441_v59 = vrot.slane %v428_v51, 1  ;;  %v429_v2 = vmul.f32 %v423_v41, %v2325_v55  ;;  %v519_v41 = vmul.f32 %v513_v18, %v2325_v55  ;;  %v2428_v51 = vld [vmem:[#allocation2 + $0x28] sm:$0x3] }
  0xb1   :  { %148 = vrot.lane.b32.xlu1 %v138_v32, %s2206_s17  ;;  %150 = vrot.lane.b32.xlu0 %v139_v33, %s2206_s17  ;;  %v349_v32 = vsel %vm271_vm0, %v347_v22, %v348_v23  ;;  %v381_v33 = vmul.f32 %v378_v24, %v2314_v46  ;;  %v437_v60 = vrot.slane %v425_v52, 1  ;;  %v438_v61 = vrot.slane %v427_v53, 1 }
  0xb2   :  { %v442_v5 = vsel %vm271_vm0, %v440_v58, %v441_v59  ;;  %v629_v58 = vpop.permute.xlu1 %628 }
  0xb3   :  { %v439_v6 = vsel %vm271_vm0, %v437_v60, %v438_v61 }
  0xb5   :  { %178 = vrot.lane.b32.xlu1 %v169_v34, %s2207_s18  ;;  %176 = vrot.lane.b32.xlu0 %v168_v35, %s2207_s18  ;;  %v383_v34 = vmul.f32 %v378_v24, %v2278_v20  ;;  %v355_v35 = vrot.slane %v340_v27, 1 }
  0xb7   :  { %v356_v42 = vsel %vm271_vm0, %v351_v21, %v355_v35 }
  0xb9   :  { %182 = vrot.lane.b32.xlu1 %v171_v37, %s2207_s18  ;;  %180 = vrot.lane.b32.xlu0 %v170_v38, %s2207_s18  ;;  %v392_v37 = vrot.slane %v380_v29, 1  ;;  %v393_v38 = vrot.slane %v382_v30, 1  ;;  %v515_v29 = vmul.f32 %v513_v18, %v2310_v43  ;;  %v517_v30 = vmul.f32 %v513_v18, %v2276_v19 }
  0xbb   :  { %v527_v35 = vrot.slane %v515_v29, 1 }
  0xbd   :  { %208 = vrot.lane.b32.xlu1 %v200_v39, %s2208_s19  ;;  %210 = vrot.lane.b32.xlu0 %v201_v40, %s2208_s19  ;;  %v395_v39 = vrot.slane %v381_v33, 1  ;;  %v396_v40 = vrot.slane %v383_v34, 1 }
  0xbf   :  { %v397_v50 = vsel %vm271_vm0, %v395_v39, %v396_v40 }
  0xc1   :  { %212 = vrot.lane.b32.xlu1 %v202_v44, %s2208_s19  ;;  %214 = vrot.lane.b32.xlu0 %v203_v45, %s2208_s19  ;;  %v354_v44 = vsel %vm271_vm0, %v348_v23, %v353_v36  ;;  %v384_v45 = vmul.f32 %v378_v24, %v2325_v55 }
  0xc3   :  { %v398_v54 = vrot.slane %v384_v45, 1 }
  0xc5   :  { %242 = vrot.lane.b32.xlu1 %v233_v47, %s2209_s20  ;;  %240 = vrot.lane.b32.xlu0 %v232_v48, %s2209_s20  ;;  %v385_v47 = vmul.f32 %v378_v24, %v2327_v56  ;;  %v394_v48 = vsel %vm271_vm0, %v392_v37, %v393_v38  ;;  %v2408_v37 = vld [vmem:[#allocation2] sm:$0xfc] }
  0xc7   :  { %v400_v57 = vrot.slane %v385_v47, 1 }
  0xc9   :  { %246 = vrot.lane.b32.xlu1 %v235_v62, %s2209_s20  ;;  %244 = vrot.lane.b32.xlu0 %v234_v63, %s2209_s20  ;;  %v468_v62 = vpop.permute.xlu0 %467  ;;  %v399_v63 = vsel %vm271_vm0, %v393_v38, %v398_v54  ;;  %v401_v0 = vsel %vm271_vm0, %v396_v40, %v400_v57  ;;  %v2410_v38 = vld [vmem:[#allocation2 + $0x8] sm:$0xfc]  ;;  %v520_v40 = vmul.f32 %v513_v18, %v2327_v56 }
  0xca   :  { %v470_v3 = vmul.f32 %v468_v62, %v2310_v43  ;;  %v472_v4 = vmul.f32 %v468_v62, %v2276_v19  ;;  %v471_v7 = vmul.f32 %v468_v62, %v2314_v46  ;;  %v473_v8 = vmul.f32 %v468_v62, %v2278_v20 }
  0xcb   :  { %v474_v23 = vmul.f32 %v468_v62, %v2325_v55  ;;  %v475_v24 = vmul.f32 %v468_v62, %v2327_v56  ;;  %v533_v56 = vrot.slane %v519_v41, 1  ;;  %v2426_v55 = vld [vmem:[#allocation2 + $0x20] sm:$0x3] }
  0xcc   :  { %v482_v11 = vrot.slane %v470_v3, 1  ;;  %v483_v12 = vrot.slane %v472_v4, 1  ;;  %v485_v16 = vrot.slane %v471_v7, 1  ;;  %v486_v17 = vrot.slane %v473_v8, 1 }
  0xcd   :  { %312 = vrot.lane.b32.xlu1 %v304_v9, %s2204_s15  ;;  %314 = vrot.lane.b32.xlu0 %v307_v10, %s2204_s15  ;;  %v445_v9 = vrot.slane %v430_v1, 1  ;;  %v443_v10 = vrot.slane %v429_v2, 1  ;;  %v584_v36 = vpop.permute.xlu0 %583  ;;  %v631_v3 = vmul.f32 %v629_v58, %v2408_v37  ;;  %v633_v4 = vmul.f32 %v629_v58, %v2276_v19 }
  0xce   :  { %v484_v27 = vsel %vm271_vm0, %v482_v11, %v483_v12  ;;  %v487_v28 = vsel %vm271_vm0, %v485_v16, %v486_v17  ;;  %v588_v47 = vmul.f32 %v584_v36, %v2276_v19  ;;  %v589_v49 = vmul.f32 %v584_v36, %v2278_v20 }
  0xcf   :  { %v446_v21 = vsel %vm271_vm0, %v441_v59, %v445_v9  ;;  %v444_v22 = vsel %vm271_vm0, %v438_v61, %v443_v10  ;;  %v590_v61 = vmul.f32 %v584_v36, %v2426_v55  ;;  %v591_v62 = vmul.f32 %v584_v36, %v2428_v51 }
  0xd0   :  { %v599_v53 = vrot.slane %v588_v47, 2  ;;  %v602_v57 = vrot.slane %v589_v49, 2  ;;  %v643_v9 = vrot.slane %v631_v3, 2  ;;  %v644_v10 = vrot.slane %v633_v4, 2 }
  0xd1   :  { %316 = vrot.lane.b32.xlu1 %v309_v25, %s2204_s15  ;;  %318 = vrot.lane.b32.xlu0 %v311_v26, %s2204_s15  ;;  %v516_v25 = vmul.f32 %v513_v18, %v2314_v46  ;;  %v518_v26 = vmul.f32 %v513_v18, %v2278_v20  ;;  %v528_v46 = vrot.slane %v517_v30, 1  ;;  %v636_v16 = vmul.f32 %v629_v58, %v2428_v51 }
  0xd3   :  { %v530_v33 = vrot.slane %v516_v25, 1  ;;  %v531_v34 = vrot.slane %v518_v26, 1  ;;  %v529_v45 = vsel %vm271_vm0, %v527_v35, %v528_v46  ;;  %v534_v60 = vsel %vm271_vm0, %v528_v46, %v533_v56  ;;  %v2069_v26 = vld [vmem:[#allocation5 + $0x13] ss:$0 sm:$0xff] }
  0xd5   :  { %359 = vrot.lane.b32.xlu1 %v352_v31, %s2205_s16  ;;  %357 = vrot.lane.b32.xlu0 %v349_v32, %s2205_s16  ;;  %v488_v31 = vrot.slane %v474_v23, 1  ;;  %v490_v32 = vrot.slane %v475_v24, 1 }
  0xd7   :  { %v489_v39 = vsel %vm271_vm0, %v483_v12, %v488_v31  ;;  %v491_v43 = vsel %vm271_vm0, %v486_v17, %v490_v32  ;;  %v635_v17 = vmul.f32 %v629_v58, %v2426_v55 }
  0xd9   :  { %363 = vrot.lane.b32.xlu1 %v356_v42, %s2205_s16  ;;  %361 = vrot.lane.b32.xlu0 %v354_v44, %s2205_s16  ;;  %v532_v42 = vsel %vm271_vm0, %v530_v33, %v531_v34  ;;  %v586_v44 = vmul.f32 %v584_v36, %v2408_v37  ;;  %v649_v23 = vrot.slane %v635_v17, 2 }
  0xdb   :  { %v598_v52 = vrot.slane %v586_v44, 2  ;;  %v650_v25 = vsel %vm567_vm1, %v644_v10, %v649_v23  ;;  %v2478_v44 = vld [vmem:[%s3396_s2] ss:$0 sm:$0xff]  ;;  %s2210_s2 = smov [#allocation7]  }
  0xdd   :  { %402 = vrot.lane.b32.xlu1 %v394_v48, %s2206_s17  ;;  %404 = vrot.lane.b32.xlu0 %v397_v50, %s2206_s17  ;;  %v587_v48 = vmul.f32 %v584_v36, %v2410_v38  ;;  %v535_v50 = vrot.slane %v520_v40, 1  ;;  %v600_v1 = vsel %vm567_vm1, %v598_v52, %v599_v53 }
  0xdf   :  { %v601_v54 = vrot.slane %v587_v48, 2  ;;  %v536_v59 = vsel %vm271_vm0, %v531_v34, %v535_v50 }
  0xe1   :  { %406 = vrot.lane.b32.xlu1 %v399_v63, %s2206_s17  ;;  %408 = vrot.lane.b32.xlu0 %v401_v0, %s2206_s17  ;;  %v632_v63 = vmul.f32 %v629_v58, %v2410_v38  ;;  %v634_v0 = vmul.f32 %v629_v58, %v2278_v20  ;;  %v603_v2 = vsel %vm567_vm1, %v601_v54, %v602_v57 }
  0xe3   :  { %v646_v7 = vrot.slane %v632_v63, 2  ;;  %v647_v8 = vrot.slane %v634_v0, 2 }
  0xe5   :  { %449 = vrot.lane.b32.xlu1 %v442_v5, %s2207_s18  ;;  %447 = vrot.lane.b32.xlu0 %v439_v6, %s2207_s18  ;;  %v604_v5 = vrot.slane %v590_v61, 2  ;;  %v606_v6 = vrot.slane %v591_v62, 2  ;;  %v648_v18 = vsel %vm567_vm1, %v646_v7, %v647_v8 }
  0xe7   :  { %v605_v11 = vsel %vm567_vm1, %v599_v53, %v604_v5  ;;  %v607_v12 = vsel %vm567_vm1, %v602_v57, %v606_v6 }
  0xe9   :  { %453 = vrot.lane.b32.xlu1 %v446_v21, %s2207_s18  ;;  %451 = vrot.lane.b32.xlu0 %v444_v22, %s2207_s18  ;;  %v645_v21 = vsel %vm567_vm1, %v643_v9, %v644_v10  ;;  %v651_v22 = vrot.slane %v636_v16, 2 }
  0xeb   :  { %v652_v24 = vsel %vm567_vm1, %v647_v8, %v651_v22 }
  0xed   :  { %492 = vrot.lane.b32.xlu1 %v484_v27, %s2208_s19  ;;  %494 = vrot.lane.b32.xlu0 %v487_v28, %s2208_s19 }
  0xf1   :  { %496 = vrot.lane.b32.xlu1 %v489_v39, %s2208_s19  ;;  %498 = vrot.lane.b32.xlu0 %v491_v43, %s2208_s19  ;;  %v2471_v43 = vld [vmem:[#allocation5] ss:$0 sm:$0xff] }
  0xf2   :  { %v59_v40 = vmul.f32 %v2471_v43, %v2273_v15 }
  0xf5   :  { %539 = vrot.lane.b32.xlu1 %v532_v42, %s2209_s20  ;;  %537 = vrot.lane.b32.xlu0 %v529_v45, %s2209_s20  ;;  %v61_v45 = vadd.f32 %v2478_v44, %v59_v40 }
  0xf9   :  { %543 = vrot.lane.b32.xlu1 %v536_v59, %s2209_s20  ;;  %541 = vrot.lane.b32.xlu0 %v534_v60, %s2209_s20 }
  0xfd   :  { %608 = vrot.lane.b32.xlu1 %v600_v1, %s2204_s15  ;;  %610 = vrot.lane.b32.xlu0 %v603_v2, %s2204_s15 }
 0x101   :  { %612 = vrot.lane.b32.xlu1 %v605_v11, %s2204_s15  ;;  %614 = vrot.lane.b32.xlu0 %v607_v12, %s2204_s15 }
 0x105   :  { %655 = vrot.lane.b32.xlu1 %v648_v18, %s2205_s16  ;;  %653 = vrot.lane.b32.xlu0 %v645_v21, %s2205_s16 }
 0x109   :  { %659 = vrot.lane.b32.xlu1 %v652_v24, %s2205_s16  ;;  %657 = vrot.lane.b32.xlu0 %v650_v25, %s2205_s16 }
 0x10d   :  { %673 = vrot.lane.b32.xlu0 %v2069_v26, %s2200_s12 }
 0x10f   :  { %v83_v27 = vpop.permute.xlu1 %82  ;;  %v81_v28 = vpop.permute.xlu0 %80 }
 0x110   :  { %v89_v49 = vsel %vm88_vm2, %v81_v28, %v83_v27 }
 0x111   :  { %v93_v50 = vadd.f32 %v89_v49, %v61_v45 }
 0x113   :  { %v2459_v29 = vpop.permute.xlu1 %84  ;;  %v2461_v30 = vpop.permute.xlu0 %86 }
 0x117   :  { %v115_v31 = vpop.permute.xlu1 %114  ;;  %v113_v32 = vpop.permute.xlu0 %112 }
 0x118   :  { %v121_v15 = vsel %vm120_vm3, %v113_v32, %v115_v31 }
 0x119   :  { %v125_v54 = vadd.f32 %v121_v15, %v93_v50 }
 0x11b   :  { %v2463_v33 = vpop.permute.xlu1 %118  ;;  %v2465_v34 = vpop.permute.xlu0 %116 }
 0x11f   :  { %v145_v35 = vpop.permute.xlu1 %144  ;;  %v147_v46 = vpop.permute.xlu0 %146 }
 0x120   :  { %v153_v53 = vsel %vm152_vm4, %v145_v35, %v147_v46 }
 0x121   :  { %v157_v58 = vadd.f32 %v153_v53, %v125_v54  ;;  %v2070_v54 = vld [vmem:[#allocation5 + $0x14] ss:$0 sm:$0xff] }
 0x123   :  { %v2467_v36 = vpop.permute.xlu1 %148  ;;  %v2469_v39 = vpop.permute.xlu0 %150 }
 0x127   :  { %v179_v41 = vpop.permute.xlu1 %178  ;;  %v177_v42 = vpop.permute.xlu0 %176 }
 0x128   :  { %v185_v57 = vsel %vm184_vm5, %v177_v42, %v179_v41 }
 0x129   :  { %v189_v62 = vadd.f32 %v185_v57, %v157_v58 }
 0x12b   :  { %v2481_v47 = vpop.permute.xlu1 %182  ;;  %v2483_v48 = vpop.permute.xlu0 %180 }
 0x12f   :  { %v209_v56 = vpop.permute.xlu1 %208  ;;  %v211_v52 = vpop.permute.xlu0 %210 }
 0x130   :  { %v217_v61 = vsel %vm216_vm6, %v209_v56, %v211_v52 }
 0x131   :  { %v221_v63 = vadd.f32 %v217_v61, %v189_v62 }
 0x133   :  { %v2489_v59 = vpop.permute.xlu1 %212  ;;  %v2491_v60 = vpop.permute.xlu0 %214 }
 0x137   :  { %v243_v0 = vpop.permute.xlu1 %242  ;;  %v241_v1 = vpop.permute.xlu0 %240 }
 0x138   :  { %v249_v2 = vsel %vm248_vm7, %v241_v1, %v243_v0 }
 0x139   :  { %v253_v3 = vadd.f32 %v249_v2, %v221_v63 }
 0x13b   :  { %v2496_v4 = vadd.f32 %v2345_v13, %v253_v3  ;;  %v2498_v5 = vpop.permute.xlu0 %244  ;;  %v2547_v57 = vpop.permute.xlu1 %246 }
 0x13f   :  { %v2500_v6 = vpop.permute.xlu0 %314  ;;  %v2549_v58 = vpop.permute.xlu1 %312 }
 0x143   :  { %v2502_v7 = vpop.permute.xlu0 %318  ;;  %v2551_v61 = vpop.permute.xlu1 %316 }
 0x147   :  { %v2504_v8 = vpop.permute.xlu0 %357  ;;  %v2553_v62 = vpop.permute.xlu1 %359 }
 0x14b   :  { %v2506_v9 = vpop.permute.xlu0 %361  ;;  %v2555_v63 = vpop.permute.xlu1 %363 }
 0x14f   :  { %v2508_v10 = vpop.permute.xlu0 %404  ;;  %v2557_v0 = vpop.permute.xlu1 %402 }
 0x153   :  { %v2510_v11 = vpop.permute.xlu0 %408  ;;  %v2559_v1 = vpop.permute.xlu1 %406 }
 0x157   :  { %v2512_v12 = vpop.permute.xlu0 %447  ;;  %v2561_v2 = vpop.permute.xlu1 %449 }
 0x15b   :  { %v2514_v16 = vpop.permute.xlu0 %451  ;;  %v2563_v3 = vpop.permute.xlu1 %453 }
 0x15f   :  { %v2516_v13 = vpop.permute.xlu0 %494 }
 0x163   :  { %v2518_v17 = vpop.permute.xlu0 %498 }
 0x167   :  { %v2520_v18 = vpop.permute.xlu0 %537 }
 0x16b   :  { %v2522_v21 = vpop.permute.xlu0 %541 }
 0x16c   :  { %3402 = vst [vmem:[#allocation11_spill] sm:$0xff] %v2522_v21 }
 0x16f   :  { %v2524_v22 = vpop.permute.xlu0 %610 }
 0x170   :  { %3403 = vst [vmem:[#allocation12_spill] sm:$0xff] %v2524_v22 }
 0x173   :  { %v2526_v23 = vpop.permute.xlu0 %614 }
 0x174   :  { %3404 = vst [vmem:[#allocation13_spill] sm:$0xff] %v2526_v23 }
 0x177   :  { %v2528_v24 = vpop.permute.xlu0 %653 }
 0x178   :  { %3405 = vst [vmem:[#allocation14_spill] sm:$0xff] %v2528_v24 }
 0x17b   :  { %v2530_v25 = vpop.permute.xlu0 %657 }
 0x17c   :  { %3406 = vst [vmem:[#allocation15_spill] sm:$0xff] %v2530_v25 }
 0x17f   :  { %v674_v26 = vpop.permute.xlu0 %673 }
 0x180   :  { %v677_v27 = vmul.f32 %v674_v26, %v2410_v38  ;;  %v679_v28 = vmul.f32 %v674_v26, %v2278_v20  ;;  %v676_v31 = vmul.f32 %v674_v26, %v2408_v37  ;;  %v678_v32 = vmul.f32 %v674_v26, %v2276_v19 }
 0x181   :  { %v681_v35 = vmul.f32 %v674_v26, %v2428_v51  ;;  %v680_v46 = vmul.f32 %v674_v26, %v2426_v55  ;;  %v2565_v26 = vpop.permute.xlu1 %492 }
 0x182   :  { %v691_v40 = vrot.slane %v677_v27, 2  ;;  %v692_v41 = vrot.slane %v679_v28, 2  ;;  %v688_v42 = vrot.slane %v676_v31, 2  ;;  %v689_v45 = vrot.slane %v678_v32, 2 }
 0x183   :  { %v696_v50 = vrot.slane %v681_v35, 2  ;;  %v694_v56 = vrot.slane %v680_v46, 2 }
 0x184   :  { %v693_v49 = vsel %vm567_vm1, %v691_v40, %v692_v41  ;;  %v690_v15 = vsel %vm567_vm1, %v688_v42, %v689_v45 }
 0x185   :  { %700 = vrot.lane.b32.xlu0 %v693_v49, %s2206_s17  ;;  %698 = vrot.lane.b32.xlu1 %v690_v15, %s2206_s17  ;;  %v697_v52 = vsel %vm567_vm1, %v692_v41, %v696_v50  ;;  %v695_v53 = vsel %vm567_vm1, %v689_v45, %v694_v56  ;;  %v2567_v27 = vpop.permute.xlu1 %496 }
 0x189   :  { %704 = vrot.lane.b32.xlu0 %v697_v52, %s2206_s17  ;;  %702 = vrot.lane.b32.xlu1 %v695_v53, %s2206_s17  ;;  %v2569_v28 = vpop.permute.xlu1 %539 }
 0x18d   :  { %718 = vrot.lane.b32.xlu1 %v2070_v54, %s2201_s13  ;;  %v2571_v31 = vpop.permute.xlu1 %543 }
 0x191   :  { %v2573_v32 = vpop.permute.xlu1 %608 }
 0x192   :  { %3407 = vst [vmem:[#allocation16_spill] sm:$0xff] %v2573_v32 }
 0x195   :  { %v2575_v35 = vpop.permute.xlu1 %612 }
 0x196   :  { %3408 = vst [vmem:[#allocation17_spill] sm:$0xff] %v2575_v35 }
 0x199   :  { %v2577_v46 = vpop.permute.xlu1 %655 }
 0x19a   :  { %3409 = vst [vmem:[#allocation18_spill] sm:$0xff] %v2577_v46 }
 0x19d   :  { %v2579_v40 = vpop.permute.xlu1 %659 }
 0x19e   :  { %3410 = vst [vmem:[#allocation19_spill] sm:$0xff] %v2579_v40 }
 0x1f7   :  { %v2581_v41 = vpop.permute.xlu1 %698 }
 0x1f8   :  { %3411 = vst [vmem:[#allocation20_spill] sm:$0xff] %v2581_v41 }
 0x1fb   :  { %v2583_v42 = vpop.permute.xlu1 %702 }
 0x1fc   :  { %3412 = vst [vmem:[#allocation21_spill] sm:$0xff] %v2583_v42 }
 0x1ff   :  { %v719_v45 = vpop.permute.xlu1 %718 }
 0x200   :  { %v722_v49 = vmul.f32 %v719_v45, %v2410_v38  ;;  %v724_v15 = vmul.f32 %v719_v45, %v2278_v20  ;;  %v721_v50 = vmul.f32 %v719_v45, %v2408_v37  ;;  %v723_v56 = vmul.f32 %v719_v45, %v2276_v19 }
 0x201   :  { %v726_v52 = vmul.f32 %v719_v45, %v2428_v51  ;;  %v725_v53 = vmul.f32 %v719_v45, %v2426_v55  ;;  %v2071_v45 = vld [vmem:[#allocation5 + $0x15] ss:$0 sm:$0xff] }
 0x202   :  { %v736_v54 = vrot.slane %v722_v49, 2  ;;  %v737_v25 = vrot.slane %v724_v15, 2  ;;  %v733_v40 = vrot.slane %v721_v50, 2  ;;  %v734_v35 = vrot.slane %v723_v56, 2  ;;  %v2600_v49 = vpop.permute.xlu0 %700 }
 0x203   :  { %v741_v23 = vrot.slane %v726_v52, 2  ;;  %v739_v24 = vrot.slane %v725_v53, 2  ;;  %3413 = vst [vmem:[#allocation22_spill] sm:$0xff] %v2600_v49 }
 0x204   :  { %v738_v41 = vsel %vm567_vm1, %v736_v54, %v737_v25  ;;  %v735_v42 = vsel %vm567_vm1, %v733_v40, %v734_v35 }
 0x205   :  { %745 = vrot.lane.b32.xlu1 %v738_v41, %s2207_s18  ;;  %743 = vrot.lane.b32.xlu0 %v735_v42, %s2207_s18  ;;  %v742_v46 = vsel %vm567_vm1, %v737_v25, %v741_v23  ;;  %v740_v32 = vsel %vm567_vm1, %v734_v35, %v739_v24 }
 0x206   :  { %v2602_v40 = vpop.permute.xlu0 %704 }
 0x207   :  { %3414 = vst [vmem:[#allocation23_spill] sm:$0xff] %v2602_v40 }
 0x209   :  { %749 = vrot.lane.b32.xlu1 %v742_v46, %s2207_s18  ;;  %747 = vrot.lane.b32.xlu0 %v740_v32, %s2207_s18 }
 0x20d   :  { %763 = vrot.lane.b32.xlu0 %v2071_v45, %s2202_s1 }
 0x277   :  { %v2604_v15 = vpop.permute.xlu0 %743 }
 0x278   :  { %3415 = vst [vmem:[#allocation24_spill] sm:$0xff] %v2604_v15 }
 0x27b   :  { %v2606_v41 = vpop.permute.xlu0 %747 }
 0x27c   :  { %3416 = vst [vmem:[#allocation25_spill] sm:$0xff] %v2606_v41 }
 0x27f   :  { %v764_v42 = vpop.permute.xlu0 %763 }
 0x280   :  { %v767_v23 = vmul.f32 %v764_v42, %v2410_v38  ;;  %v769_v24 = vmul.f32 %v764_v42, %v2278_v20  ;;  %v766_v25 = vmul.f32 %v764_v42, %v2408_v37  ;;  %v768_v32 = vmul.f32 %v764_v42, %v2276_v19 }
 0x281   :  { %v771_v35 = vmul.f32 %v764_v42, %v2428_v51  ;;  %v770_v46 = vmul.f32 %v764_v42, %v2426_v55  ;;  %v2072_v42 = vld [vmem:[#allocation5 + $0x16] ss:$0 sm:$0xff] }
 0x282   :  { %v781_v50 = vrot.slane %v767_v23, 2  ;;  %v782_v56 = vrot.slane %v769_v24, 2  ;;  %v778_v52 = vrot.slane %v766_v25, 2  ;;  %v779_v53 = vrot.slane %v768_v32, 2  ;;  %v2623_v23 = vpop.permute.xlu1 %745 }
 0x283   :  { %v786_v41 = vrot.slane %v771_v35, 2  ;;  %v784_v40 = vrot.slane %v770_v46, 2  ;;  %3417 = vst [vmem:[#allocation26_spill] sm:$0xff] %v2623_v23 }
 0x284   :  { %v783_v54 = vsel %vm567_vm1, %v781_v50, %v782_v56  ;;  %v780_v45 = vsel %vm567_vm1, %v778_v52, %v779_v53 }
 0x285   :  { %790 = vrot.lane.b32.xlu0 %v783_v54, %s2208_s19  ;;  %788 = vrot.lane.b32.xlu1 %v780_v45, %s2208_s19  ;;  %v787_v15 = vsel %vm567_vm1, %v782_v56, %v786_v41  ;;  %v785_v49 = vsel %vm567_vm1, %v779_v53, %v784_v40 }
 0x286   :  { %v2625_v24 = vpop.permute.xlu1 %749 }
 0x287   :  { %3418 = vst [vmem:[#allocation27_spill] sm:$0xff] %v2625_v24 }
 0x289   :  { %794 = vrot.lane.b32.xlu0 %v787_v15, %s2208_s19  ;;  %792 = vrot.lane.b32.xlu1 %v785_v49, %s2208_s19 }
 0x28d   :  { %808 = vrot.lane.b32.xlu1 %v2072_v42, %s2203_s14 }
 0x2f7   :  { %v2627_v25 = vpop.permute.xlu1 %788 }
 0x2f8   :  { %3419 = vst [vmem:[#allocation28_spill] sm:$0xff] %v2627_v25 }
 0x2fb   :  { %v2629_v32 = vpop.permute.xlu1 %792 }
 0x2fc   :  { %3420 = vst [vmem:[#allocation29_spill] sm:$0xff] %v2629_v32 }
 0x2ff   :  { %v809_v35 = vpop.permute.xlu1 %808 }
 0x300   :  { %v812_v41 = vmul.f32 %v809_v35, %v2410_v38  ;;  %v814_v40 = vmul.f32 %v809_v35, %v2278_v20  ;;  %v811_v15 = vmul.f32 %v809_v35, %v2408_v37  ;;  %v813_v49 = vmul.f32 %v809_v35, %v2276_v19 }
 0x301   :  { %v816_v46 = vmul.f32 %v809_v35, %v2428_v51  ;;  %v815_v50 = vmul.f32 %v809_v35, %v2426_v55  ;;  %v2074_v35 = vld [vmem:[#allocation5 + $0x19] ss:$0 sm:$0xff] }
 0x302   :  { %v826_v56 = vrot.slane %v812_v41, 2  ;;  %v827_v52 = vrot.slane %v814_v40, 2  ;;  %v823_v53 = vrot.slane %v811_v15, 2  ;;  %v824_v54 = vrot.slane %v813_v49, 2  ;;  %v2646_v41 = vpop.permute.xlu0 %790 }
 0x303   :  { %v831_v32 = vrot.slane %v816_v46, 2  ;;  %v829_v38 = vrot.slane %v815_v50, 2  ;;  %3421 = vst [vmem:[#allocation30_spill] sm:$0xff] %v2646_v41  ;;  %v2654_v46 = vld [vmem:[#allocation2 + $0x8] sm:$0xf8] }
 0x304   :  { %v828_v45 = vsel %vm567_vm1, %v826_v56, %v827_v52  ;;  %v825_v42 = vsel %vm567_vm1, %v823_v53, %v824_v54  ;;  %3425 = vst [vmem:[#allocation34_spill] sm:$0xff] %v2654_v46  ;;  %v2658_v56 = vld [vmem:[#allocation2] sm:$0xf8] }
 0x305   :  { %835 = vrot.lane.b32.xlu1 %v828_v45, %s2209_s20  ;;  %833 = vrot.lane.b32.xlu0 %v825_v42, %s2209_s20  ;;  %v832_v24 = vsel %vm567_vm1, %v827_v52, %v831_v32  ;;  %v830_v51 = vsel %vm567_vm1, %v824_v54, %v829_v38  ;;  %v2656_v32 = vld [vmem:[#allocation2 + $0x28] sm:$0x7]  ;;  %v2664_v45 = vld [vmem:[#allocation2 + $0x20] sm:$0x7] }
 0x306   :  { %v2648_v40 = vpop.permute.xlu0 %794  ;;  %3426 = vst [vmem:[#allocation35_spill] sm:$0xff] %v2656_v32 }
 0x307   :  { %3422 = vst [vmem:[#allocation31_spill] sm:$0xff] %v2648_v40 }
 0x309   :  { %839 = vrot.lane.b32.xlu1 %v832_v24, %s2209_s20  ;;  %837 = vrot.lane.b32.xlu0 %v830_v51, %s2209_s20 }
 0x30d   :  { %879 = vrot.lane.b32.xlu0 %v2074_v35, %s2199_s9 }
 0x377   :  { %v2650_v15 = vpop.permute.xlu0 %833 }
 0x378   :  { %3423 = vst [vmem:[#allocation32_spill] sm:$0xff] %v2650_v15 }
 0x37b   :  { %v2652_v49 = vpop.permute.xlu0 %837 }
 0x37c   :  { %3424 = vst [vmem:[#allocation33_spill] sm:$0xff] %v2652_v49 }
 0x37f   :  { %v880_v50 = vpop.permute.xlu0 %879 }
 0x380   :  { %v883_v24 = vmul.f32 %v880_v50, %v2654_v46  ;;  %v885_v52 = vmul.f32 %v880_v50, %v2278_v20  ;;  %v882_v53 = vmul.f32 %v880_v50, %v2658_v56  ;;  %v884_v54 = vmul.f32 %v880_v50, %v2276_v19 }
 0x381   :  { %v887_v42 = vmul.f32 %v880_v50, %v2656_v32  ;;  %v886_v38 = vmul.f32 %v880_v50, %v2664_v45  ;;  %v2075_v50 = vld [vmem:[#allocation5 + $0x1a] ss:$0 sm:$0xff] }
 0x382   :  { %v897_v51 = vrot.slane %v883_v24, 3  ;;  %v898_v35 = vrot.slane %v885_v52, 3  ;;  %v894_v49 = vrot.slane %v882_v53, 3  ;;  %v895_v40 = vrot.slane %v884_v54, 3  ;;  %v2677_v24 = vpop.permute.xlu1 %835 }
 0x383   :  { %v902_v41 = vrot.slane %v887_v42, 3  ;;  %v900_v23 = vrot.slane %v886_v38, 3  ;;  %3427 = vst [vmem:[#allocation36_spill] sm:$0xff] %v2677_v24 }
 0x384   :  { %v899_v15 = vsel %vm863_vm8, %v897_v51, %v898_v35  ;;  %v896_v25 = vsel %vm863_vm8, %v894_v49, %v895_v40 }
 0x385   :  { %906 = vrot.lane.b32.xlu0 %v899_v15, %s2204_s15  ;;  %904 = vrot.lane.b32.xlu1 %v896_v25, %s2204_s15  ;;  %v903_v22 = vsel %vm863_vm8, %v898_v35, %v902_v41  ;;  %v901_v21 = vsel %vm863_vm8, %v895_v40, %v900_v23 }
 0x386   :  { %v2679_v49 = vpop.permute.xlu1 %839 }
 0x387   :  { %3428 = vst [vmem:[#allocation37_spill] sm:$0xff] %v2679_v49 }
 0x389   :  { %910 = vrot.lane.b32.xlu0 %v903_v22, %s2204_s15  ;;  %908 = vrot.lane.b32.xlu1 %v901_v21, %s2204_s15 }
 0x38d   :  { %924 = vrot.lane.b32.xlu1 %v2075_v50, %s2196_s23 }
 0x3f7   :  { %v2681_v52 = vpop.permute.xlu1 %904 }
 0x3f8   :  { %3429 = vst [vmem:[#allocation38_spill] sm:$0xff] %v2681_v52 }
 0x3fb   :  { %v2683_v15 = vpop.permute.xlu1 %908 }
 0x3fc   :  { %3430 = vst [vmem:[#allocation39_spill] sm:$0xff] %v2683_v15 }
 0x3ff   :  { %v925_v25 = vpop.permute.xlu1 %924 }
 0x400   :  { %v928_v41 = vmul.f32 %v925_v25, %v2654_v46  ;;  %v930_v23 = vmul.f32 %v925_v25, %v2278_v20  ;;  %v927_v22 = vmul.f32 %v925_v25, %v2658_v56  ;;  %v929_v21 = vmul.f32 %v925_v25, %v2276_v19 }
 0x401   :  { %v932_v40 = vmul.f32 %v925_v25, %v2656_v32  ;;  %v931_v53 = vmul.f32 %v925_v25, %v2664_v45  ;;  %v2076_v25 = vld [vmem:[#allocation5 + $0x1b] ss:$0 sm:$0xff] }
 0x402   :  { %v942_v54 = vrot.slane %v928_v41, 3  ;;  %v943_v42 = vrot.slane %v930_v23, 3  ;;  %v939_v38 = vrot.slane %v927_v22, 3  ;;  %v940_v51 = vrot.slane %v929_v21, 3  ;;  %v2700_v41 = vpop.permute.xlu0 %906 }
 0x403   :  { %v947_v15 = vrot.slane %v932_v40, 3  ;;  %v945_v52 = vrot.slane %v931_v53, 3  ;;  %3431 = vst [vmem:[#allocation40_spill] sm:$0xff] %v2700_v41 }
 0x404   :  { %v944_v35 = vsel %vm863_vm8, %v942_v54, %v943_v42  ;;  %v941_v50 = vsel %vm863_vm8, %v939_v38, %v940_v51 }
 0x405   :  { %951 = vrot.lane.b32.xlu1 %v944_v35, %s2205_s16  ;;  %949 = vrot.lane.b32.xlu0 %v941_v50, %s2205_s16  ;;  %v948_v49 = vsel %vm863_vm8, %v943_v42, %v947_v15  ;;  %v946_v24 = vsel %vm863_vm8, %v940_v51, %v945_v52 }
 0x406   :  { %v2702_v23 = vpop.permute.xlu0 %910 }
 0x407   :  { %3432 = vst [vmem:[#allocation41_spill] sm:$0xff] %v2702_v23 }
 0x409   :  { %955 = vrot.lane.b32.xlu1 %v948_v49, %s2205_s16  ;;  %953 = vrot.lane.b32.xlu0 %v946_v24, %s2205_s16 }
 0x40d   :  { %969 = vrot.lane.b32.xlu0 %v2076_v25, %s2200_s12 }
 0x477   :  { %v2704_v22 = vpop.permute.xlu0 %949 }
 0x478   :  { %3433 = vst [vmem:[#allocation42_spill] sm:$0xff] %v2704_v22 }
 0x47b   :  { %v2706_v21 = vpop.permute.xlu0 %953 }
 0x47c   :  { %3434 = vst [vmem:[#allocation43_spill] sm:$0xff] %v2706_v21 }
 0x47f   :  { %v970_v40 = vpop.permute.xlu0 %969 }
 0x480   :  { %v973_v15 = vmul.f32 %v970_v40, %v2654_v46  ;;  %v975_v52 = vmul.f32 %v970_v40, %v2278_v20  ;;  %v972_v49 = vmul.f32 %v970_v40, %v2658_v56  ;;  %v974_v24 = vmul.f32 %v970_v40, %v2276_v19 }
 0x481   :  { %v977_v53 = vmul.f32 %v970_v40, %v2656_v32  ;;  %v976_v54 = vmul.f32 %v970_v40, %v2664_v45  ;;  %v2077_v40 = vld [vmem:[#allocation5 + $0x1c] ss:$0 sm:$0xff] }
 0x482   :  { %v987_v42 = vrot.slane %v973_v15, 3  ;;  %v988_v38 = vrot.slane %v975_v52, 3  ;;  %v984_v51 = vrot.slane %v972_v49, 3  ;;  %v985_v35 = vrot.slane %v974_v24, 3  ;;  %v2723_v15 = vpop.permute.xlu1 %951 }
 0x483   :  { %v992_v21 = vrot.slane %v977_v53, 3  ;;  %v990_v23 = vrot.slane %v976_v54, 3  ;;  %3435 = vst [vmem:[#allocation44_spill] sm:$0xff] %v2723_v15  ;;  %v2732_v54 = vld [vmem:[#allocation2 + $0x18] sm:$0xff] }
 0x484   :  { %v989_v50 = vsel %vm863_vm8, %v987_v42, %v988_v38  ;;  %v986_v25 = vsel %vm863_vm8, %v984_v51, %v985_v35  ;;  %3439 = vst [vmem:[#allocation48_spill] sm:$0xff] %v2732_v54 }
 0x485   :  { %996 = vrot.lane.b32.xlu0 %v989_v50, %s2206_s17  ;;  %994 = vrot.lane.b32.xlu1 %v986_v25, %s2206_s17  ;;  %v993_v19 = vsel %vm863_vm8, %v988_v38, %v992_v21  ;;  %v991_v20 = vsel %vm863_vm8, %v985_v35, %v990_v23  ;;  %v2736_v38 = vld [vmem:[#allocation2 + $0x10] sm:$0xff] }
 0x486   :  { %v2725_v52 = vpop.permute.xlu1 %955 }
 0x487   :  { %3436 = vst [vmem:[#allocation45_spill] sm:$0xff] %v2725_v52 }
 0x489   :  { %1000 = vrot.lane.b32.xlu0 %v993_v19, %s2206_s17  ;;  %998 = vrot.lane.b32.xlu1 %v991_v20, %s2206_s17 }
 0x48d   :  { %1014 = vrot.lane.b32.xlu1 %v2077_v40, %s2201_s13 }
 0x4f7   :  { %v2727_v49 = vpop.permute.xlu1 %994 }
 0x4f8   :  { %3437 = vst [vmem:[#allocation46_spill] sm:$0xff] %v2727_v49 }
 0x4fb   :  { %v2729_v24 = vpop.permute.xlu1 %998 }
 0x4fc   :  { %3438 = vst [vmem:[#allocation47_spill] sm:$0xff] %v2729_v24 }
 0x4ff   :  { %v1015_v53 = vpop.permute.xlu1 %1014 }
 0x500   :  { %v1018_v21 = vmul.f32 %v1015_v53, %v2654_v46  ;;  %v1020_v23 = vmul.f32 %v2732_v54, %v1015_v53  ;;  %v1017_v42 = vmul.f32 %v1015_v53, %v2658_v56  ;;  %v1019_v51 = vmul.f32 %v2736_v38, %v1015_v53 }
 0x501   :  { %v1022_v35 = vmul.f32 %v1015_v53, %v2656_v32  ;;  %v1021_v50 = vmul.f32 %v1015_v53, %v2664_v45  ;;  %v2078_v53 = vld [vmem:[#allocation5 + $0x1d] ss:$0 sm:$0xff] }
 0x502   :  { %v1032_v25 = vrot.slane %v1018_v21, 3  ;;  %v1033_v19 = vrot.slane %v1020_v23, 3  ;;  %v1029_v20 = vrot.slane %v1017_v42, 3  ;;  %v1030_v40 = vrot.slane %v1019_v51, 3  ;;  %v2750_v21 = vpop.permute.xlu0 %996 }
 0x503   :  { %v1037_v49 = vrot.slane %v1022_v35, 3  ;;  %v1035_v22 = vrot.slane %v1021_v50, 3 }
 0x504   :  { %v1034_v24 = vsel %vm863_vm8, %v1032_v25, %v1033_v19  ;;  %v1031_v52 = vsel %vm863_vm8, %v1029_v20, %v1030_v40 }
 0x505   :  { %1041 = vrot.lane.b32.xlu1 %v1034_v24, %s2207_s18  ;;  %1039 = vrot.lane.b32.xlu0 %v1031_v52, %s2207_s18  ;;  %v1038_v15 = vsel %vm863_vm8, %v1033_v19, %v1037_v49  ;;  %v1036_v41 = vsel %vm863_vm8, %v1030_v40, %v1035_v22 }
 0x506   :  { %v2752_v23 = vpop.permute.xlu0 %1000 }
 0x509   :  { %1045 = vrot.lane.b32.xlu1 %v1038_v15, %s2207_s18  ;;  %1043 = vrot.lane.b32.xlu0 %v1036_v41, %s2207_s18 }
 0x50d   :  { %1059 = vrot.lane.b32.xlu0 %v2078_v53, %s2202_s1 }
 0x577   :  { %v2754_v42 = vpop.permute.xlu0 %1039 }
 0x57b   :  { %v2756_v24 = vpop.permute.xlu0 %1043 }
 0x57c   :  { %3440 = vst [vmem:[#allocation49_spill] sm:$0xff] %v2756_v24 }
 0x57f   :  { %v1060_v52 = vpop.permute.xlu0 %1059 }
 0x580   :  { %v1063_v49 = vmul.f32 %v1060_v52, %v2654_v46  ;;  %v1065_v22 = vmul.f32 %v2732_v54, %v1060_v52  ;;  %v1062_v15 = vmul.f32 %v1060_v52, %v2658_v56  ;;  %v1064_v41 = vmul.f32 %v2736_v38, %v1060_v52 }
 0x581   :  { %v1067_v51 = vmul.f32 %v1060_v52, %v2656_v32  ;;  %v1066_v35 = vmul.f32 %v1060_v52, %v2664_v45  ;;  %v2079_v52 = vld [vmem:[#allocation5 + $0x1e] ss:$0 sm:$0xff] }
 0x582   :  { %v1077_v50 = vrot.slane %v1063_v49, 3  ;;  %v1078_v25 = vrot.slane %v1065_v22, 3  ;;  %v1074_v19 = vrot.slane %v1062_v15, 3  ;;  %v1075_v20 = vrot.slane %v1064_v41, 3 }
 0x583   :  { %v1082_v24 = vrot.slane %v1067_v51, 3  ;;  %v1080_v46 = vrot.slane %v1066_v35, 3  ;;  %v60_v49 = vmul.f32 %v2736_v38, %v2471_v43  ;;  %v90_v15 = vsel %vm88_vm2, %v2459_v29, %v2461_v30 }
 0x584   :  { %v1079_v40 = vsel %vm863_vm8, %v1077_v50, %v1078_v25  ;;  %v1076_v53 = vsel %vm863_vm8, %v1074_v19, %v1075_v20  ;;  %v186_v43 = vsel %vm184_vm5, %v2483_v48, %v2481_v47  ;;  %v250_v30 = vsel %vm248_vm7, %v2498_v5, %v2547_v57  ;;  %v2066_v47 = vld [vmem:[#allocation5 + $0x10] ss:$0 sm:$0xff] }
 0x585   :  { %1086 = vrot.lane.b32.xlu0 %v1079_v40, %s2208_s19  ;;  %1084 = vrot.lane.b32.xlu1 %v1076_v53, %s2208_s19  ;;  %v1083_v54 = vsel %vm863_vm8, %v1078_v25, %v1082_v24  ;;  %v1081_v32 = vsel %vm863_vm8, %v1075_v20, %v1080_v46  ;;  %v62_v22 = vadd.f32 %v2478_v44, %v60_v49  ;;  %v3442_v19 = vld [vmem:[#allocation12_spill] sm:$0xff]  ;;  %v3444_v53 = vld [vmem:[#allocation18_spill] sm:$0xff]  ;;  %v2073_v49 = vld [vmem:[#allocation5 + $0x18] ss:$0 sm:$0xff] }
 0x586   :  { %v122_v46 = vsel %vm120_vm3, %v2465_v34, %v2463_v33  ;;  %v218_v44 = vsel %vm216_vm6, %v2489_v59, %v2491_v60  ;;  %v320_v34 = vsel %vm88_vm2, %v2549_v58, %v2500_v6  ;;  %v321_v59 = vsel %vm88_vm2, %v2551_v61, %v2502_v7 }
 0x587   :  { %v94_v24 = vadd.f32 %v90_v15, %v62_v22  ;;  %v324_v48 = vadd.f32 %v320_v34, %v2496_v4  ;;  %v410_v60 = vsel %vm152_vm4, %v2557_v0, %v2508_v10  ;;  %v561_v6 = vmul.f32 %v2066_v47, %v2408_v37  ;;  %v3446_v22 = vld [vmem:[#allocation13_spill] sm:$0xff] }
 0x588   :  { %v455_v4 = vsel %vm184_vm5, %v2512_v12, %v2561_v2  ;;  %v562_v58 = vmul.f32 %v2736_v38, %v2066_v47  ;;  %v411_v10 = vsel %vm152_vm4, %v2559_v1, %v2510_v11  ;;  %v563_v2 = vmul.f32 %v2066_v47, %v2426_v55  ;;  %v3447_v15 = vld [vmem:[#allocation17_spill] sm:$0xff] }
 0x589   :  { %1090 = vrot.lane.b32.xlu0 %v1083_v54, %s2208_s19  ;;  %1088 = vrot.lane.b32.xlu1 %v1081_v32, %s2208_s19  ;;  %v154_v32 = vsel %vm152_vm4, %v2467_v36, %v2469_v39  ;;  %v126_v54 = vadd.f32 %v122_v46, %v94_v24  ;;  %v365_v39 = vsel %vm120_vm3, %v2504_v8, %v2553_v62  ;;  %v568_v0 = vrot.slane %v561_v6, 2  ;;  %v3449_v24 = vld [vmem:[#allocation20_spill] sm:$0xff] }
 0x58a   :  { %v369_v57 = vadd.f32 %v365_v39, %v324_v48  ;;  %v366_v8 = vsel %vm120_vm3, %v2506_v9, %v2555_v63  ;;  %v456_v9 = vsel %vm184_vm5, %v2514_v16, %v2563_v3  ;;  %v569_v12 = vrot.slane %v562_v58, 2  ;;  %v3441_v16 = vld [vmem:[#allocation11_spill] sm:$0xff]  ;;  %v3457_v6 = vld [vmem:[#allocation28_spill] sm:$0xff] }
 0x58b   :  { %v158_v41 = vadd.f32 %v154_v32, %v126_v54  ;;  %v545_v63 = vsel %vm248_vm7, %v2520_v18, %v2569_v28  ;;  %v571_v50 = vrot.slane %v563_v2, 2  ;;  %v546_v3 = vsel %vm248_vm7, %v3441_v16, %v2571_v31  ;;  %v3443_v18 = vld [vmem:[#allocation16_spill] sm:$0xff]  ;;  %v3448_v31 = vld [vmem:[#allocation22_spill] sm:$0xff] }
 0x58c   :  { %v414_v61 = vadd.f32 %v410_v60, %v369_v57  ;;  %v570_v35 = vsel %vm567_vm1, %v568_v0, %v569_v12  ;;  %v616_v55 = vsel %vm88_vm2, %v3443_v18, %v3442_v19  ;;  %v617_v46 = vsel %vm88_vm2, %v3447_v15, %v3446_v22  ;;  %v3455_v60 = vld [vmem:[#allocation21_spill] sm:$0xff]  ;;  %v3456_v57 = vld [vmem:[#allocation30_spill] sm:$0xff]  ;;  %v1042_v18 = vpop.permute.xlu1 %1041 }
 0x58d   :  { %1104 = vrot.lane.b32.xlu1 %v2079_v52, %s2203_s14  ;;  %v190_v29 = vadd.f32 %v186_v43, %v158_v41  ;;  %v572_v40 = vsel %vm567_vm1, %v569_v12, %v571_v50  ;;  %v706_v32 = vsel %vm152_vm4, %v3449_v24, %v3448_v31  ;;  %v3450_v41 = vld [vmem:[#allocation19_spill] sm:$0xff]  ;;  %v858_v39 = vmul.f32 %v2736_v38, %v2073_v49  ;;  %v3465_v50 = vld [vmem:[#allocation33_spill] sm:$0xff]  ;;  %v3472_v24 = vld [vmem:[#allocation46_spill] sm:$0xff] }
 0x58e   :  { %v459_v62 = vadd.f32 %v455_v4, %v414_v61  ;;  %v3459_v61 = vld [vmem:[#allocation25_spill] sm:$0xff]  ;;  %v859_v12 = vmul.f32 %v2073_v49, %v2664_v45 }
 0x58f   :  { %v222_v33 = vadd.f32 %v218_v44, %v190_v29  ;;  %v3451_v44 = vld [vmem:[#allocation15_spill] sm:$0xff]  ;;  %v3470_v15 = vld [vmem:[#allocation41_spill] sm:$0xff] }
 0x590   :  { %v662_v29 = vsel %vm120_vm3, %v3451_v44, %v3450_v41  ;;  %v1046_v41 = vpop.permute.xlu1 %1045  ;;  %v3473_v44 = vld [vmem:[#allocation45_spill] sm:$0xff] }
 0x591   :  { %v254_v36 = vadd.f32 %v250_v30, %v222_v33  ;;  %v3452_v30 = vld [vmem:[#allocation26_spill] sm:$0xff]  ;;  %v3453_v33 = vld [vmem:[#allocation24_spill] sm:$0xff] }
 0x592   :  { %v751_v34 = vsel %vm184_vm5, %v3453_v33, %v3452_v30  ;;  %v1047_v33 = vsel %vm184_vm5, %v2754_v42, %v1042_v18 }
 0x593   :  { %v280_v5 = vadd.f32 %v2348_v14, %v254_v36  ;;  %v500_v14 = vsel %vm216_vm6, %v2565_v26, %v2516_v13  ;;  %v501_v13 = vsel %vm216_vm6, %v2567_v27, %v2518_v17  ;;  %v3445_v17 = vld [vmem:[#allocation14_spill] sm:$0xff]  ;;  %v857_v36 = vmul.f32 %v2073_v49, %v2658_v56 }
 0x594   :  { %v504_v11 = vadd.f32 %v500_v14, %v459_v62  ;;  %v661_v27 = vsel %vm120_vm3, %v3445_v17, %v3444_v53  ;;  %v3460_v14 = vld [vmem:[#allocation36_spill] sm:$0xff] }
 0x595   :  { %v325_v7 = vadd.f32 %v321_v59, %v280_v5  ;;  %v3454_v59 = vld [vmem:[#allocation23_spill] sm:$0xff]  ;;  %v864_v0 = vrot.slane %v857_v36, 3 }
 0x596   :  { %v549_v26 = vadd.f32 %v545_v63, %v504_v11  ;;  %v707_v5 = vsel %vm152_vm4, %v3455_v60, %v3454_v59  ;;  %v3463_v11 = vld [vmem:[#allocation29_spill] sm:$0xff] }
 0x597   :  { %v370_v37 = vadd.f32 %v366_v8, %v325_v7  ;;  %v796_v8 = vsel %vm216_vm6, %v3457_v6, %v3456_v57  ;;  %v3458_v7 = vld [vmem:[#allocation27_spill] sm:$0xff] }
 0x598   :  { %v575_v28 = vadd.f32 %v570_v35, %v549_v26  ;;  %v3464_v35 = vld [vmem:[#allocation37_spill] sm:$0xff] }
 0x599   :  { %v415_v51 = vadd.f32 %v411_v10, %v370_v37  ;;  %v752_v10 = vsel %vm184_vm5, %v3459_v61, %v3458_v7  ;;  %v3461_v37 = vld [vmem:[#allocation32_spill] sm:$0xff]  ;;  %v842_v16 = vsel %vm248_vm7, %v3465_v50, %v3464_v35 }
 0x59a   :  { %v620_v52 = vadd.f32 %v616_v55, %v575_v28  ;;  %v841_v62 = vsel %vm248_vm7, %v3461_v37, %v3460_v14  ;;  %v3466_v55 = vld [vmem:[#allocation40_spill] sm:$0xff]  ;;  %v3467_v28 = vld [vmem:[#allocation38_spill] sm:$0xff] }
 0x59b   :  { %v460_v1 = vadd.f32 %v456_v9, %v415_v51  ;;  %v865_v9 = vrot.slane %v858_v39, 3  ;;  %v3462_v51 = vld [vmem:[#allocation31_spill] sm:$0xff]  ;;  %v3477_v37 = vld [vmem:[#allocation34_spill] sm:$0xff] }
 0x59c   :  { %v665_v43 = vadd.f32 %v661_v27, %v620_v52  ;;  %v3468_v27 = vld [vmem:[#allocation44_spill] sm:$0xff]  ;;  %v3469_v52 = vld [vmem:[#allocation42_spill] sm:$0xff]  ;;  %v3475_v39 = vld [vmem:[#allocation47_spill] sm:$0xff] }
 0x59d   :  { %v505_v25 = vadd.f32 %v501_v13, %v460_v1  ;;  %v797_v13 = vsel %vm216_vm6, %v3463_v11, %v3462_v51  ;;  %v957_v49 = vsel %vm120_vm3, %v3469_v52, %v3468_v27  ;;  %v2919_v27 = vld [vmem:[#allocation2 + $0x8] sm:$0xf0]  ;;  %v2921_v52 = vld [vmem:[#allocation2 + $0x28] sm:$0xf] }
 0x59e   :  { %v710_v48 = vadd.f32 %v706_v32, %v665_v43  ;;  %v1002_v32 = vsel %vm152_vm4, %v3472_v24, %v2750_v21 }
 0x59f   :  { %v550_v20 = vadd.f32 %v546_v3, %v505_v25  ;;  %v866_v3 = vsel %vm863_vm8, %v864_v0, %v865_v9  ;;  %v867_v25 = vrot.slane %v859_v12, 3 }
 0x5a0   :  { %v755_v58 = vadd.f32 %v751_v34, %v710_v48 }
 0x5a1   :  { %v576_v54 = vadd.f32 %v572_v40, %v550_v20  ;;  %v912_v20 = vsel %vm88_vm2, %v3467_v28, %v3466_v55  ;;  %v868_v17 = vsel %vm863_vm8, %v865_v9, %v867_v25 }
 0x5a2   :  { %v800_v2 = vadd.f32 %v796_v8, %v755_v58 }
 0x5a3   :  { %v621_v47 = vadd.f32 %v617_v46, %v576_v54  ;;  %v3471_v46 = vld [vmem:[#allocation39_spill] sm:$0xff] }
 0x5a4   :  { %v845_v26 = vadd.f32 %v841_v62, %v800_v2  ;;  %v913_v31 = vsel %vm88_vm2, %v3471_v46, %v3470_v15  ;;  %v3478_v62 = vld [vmem:[#allocation48_spill] sm:$0xff] }
 0x5a5   :  { %v666_v4 = vadd.f32 %v662_v29, %v621_v47  ;;  %v3474_v29 = vld [vmem:[#allocation43_spill] sm:$0xff]  ;;  %v1003_v47 = vsel %vm152_vm4, %v3475_v39, %v2752_v23 }
 0x5a6   :  { %v871_v53 = vadd.f32 %v866_v3, %v845_v26  ;;  %v958_v30 = vsel %vm120_vm3, %v3474_v29, %v3473_v44 }
 0x5a7   :  { %v711_v63 = vadd.f32 %v707_v5, %v666_v4  ;;  %v3476_v5 = vld [vmem:[#allocation49_spill] sm:$0xff] }
 0x5a8   :  { %v916_v22 = vadd.f32 %v912_v20, %v871_v53  ;;  %v1048_v57 = vsel %vm184_vm5, %v3476_v5, %v1046_v41 }
 0x5a9   :  { %v756_v1 = vadd.f32 %v752_v10, %v711_v63  ;;  %v3479_v63 = vld [vmem:[#allocation35_spill] sm:$0xff] }
 0x5aa   :  { %v961_v43 = vadd.f32 %v957_v49, %v916_v22  ;;  %v2923_v22 = vld [vmem:[#allocation2] sm:$0xf0] }
 0x5ab   :  { %v801_v19 = vadd.f32 %v797_v13, %v756_v1 }
 0x5ac   :  { %v1006_v36 = vadd.f32 %v1002_v32, %v961_v43  ;;  %v2929_v32 = vld [vmem:[#allocation2 + $0x20] sm:$0xf] }
 0x5ad   :  { %v846_v40 = vadd.f32 %v842_v16, %v801_v19 }
 0x5ae   :  { %v1051_v59 = vadd.f32 %v1047_v33, %v1006_v36 }
 0x5af   :  { %v872_v54 = vadd.f32 %v868_v17, %v846_v40 }
 0x5b1   :  { %v917_v34 = vadd.f32 %v913_v31, %v872_v54 }
 0x5b3   :  { %v962_v48 = vadd.f32 %v958_v30, %v917_v34 }
 0x5b5   :  { %v1007_v8 = vadd.f32 %v1003_v47, %v962_v48 }
 0x5b7   :  { %v1052_v58 = vadd.f32 %v1048_v57, %v1007_v8 }
 0x5f7   :  { %v1087_v60 = vpop.permute.xlu0 %1086  ;;  %v1085_v21 = vpop.permute.xlu1 %1084 }
 0x5f8   :  { %v1092_v6 = vsel %vm216_vm6, %v1085_v21, %v1087_v60  ;;  %v2080_v60 = vld [vmem:[#allocation5 + $0x20] ss:$0 sm:$0xff] }
 0x5f9   :  { %v1096_v4 = vadd.f32 %v1092_v6, %v1051_v59  ;;  %v2082_v59 = vld [vmem:[#allocation5 + $0x22] ss:$0 sm:$0xff]  ;;  %v1153_v21 = vmul.f32 %v2080_v60, %v2923_v22  ;;  %v1154_v5 = vmul.f32 %v2736_v38, %v2080_v60  ;;  %v1155_v8 = vmul.f32 %v2080_v60, %v2929_v32 }
 0x5fb   :  { %v1091_v7 = vpop.permute.xlu0 %1090  ;;  %v1089_v42 = vpop.permute.xlu1 %1088  ;;  %v1160_v57 = vrot.slane %v1153_v21, 4  ;;  %v1161_v6 = vrot.slane %v1154_v5, 4 }
 0x5fc   :  { %v1093_v61 = vsel %vm216_vm6, %v1089_v42, %v1091_v7 }
 0x5fd   :  { %v1097_v10 = vadd.f32 %v1093_v61, %v1052_v58  ;;  %v1163_v58 = vrot.slane %v1155_v8, 4 }
 0x5ff   :  { %v1105_v14 = vpop.permute.xlu1 %1104 }
 0x600   :  { %v1108_v23 = vmul.f32 %v1105_v14, %v3477_v37  ;;  %v1110_v0 = vmul.f32 %v3478_v62, %v1105_v14  ;;  %v1107_v9 = vmul.f32 %v1105_v14, %v2658_v56  ;;  %v1109_v12 = vmul.f32 %v2736_v38, %v1105_v14 }
 0x601   :  { %v1112_v2 = vmul.f32 %v1105_v14, %v3479_v63  ;;  %v1111_v51 = vmul.f32 %v1105_v14, %v2664_v45  ;;  %v2081_v45 = vld [vmem:[#allocation5 + $0x21] ss:$0 sm:$0xff]  ;;  %v1164_v14 = vsel %vm1159_vm9, %v1161_v6, %v1163_v58 }
 0x602   :  { %v1122_v11 = vrot.slane %v1108_v23, 3  ;;  %v1123_v13 = vrot.slane %v1110_v0, 3  ;;  %v1119_v1 = vrot.slane %v1107_v9, 3  ;;  %v1120_v26 = vrot.slane %v1109_v12, 3 }
 0x603   :  { %v1127_v16 = vrot.slane %v1112_v2, 3  ;;  %v1125_v3 = vrot.slane %v1111_v51, 3 }
 0x604   :  { %v1124_v35 = vsel %vm863_vm8, %v1122_v11, %v1123_v13  ;;  %v1121_v50 = vsel %vm863_vm8, %v1119_v1, %v1120_v26 }
 0x605   :  { %1131 = vrot.lane.b32.xlu1 %v1124_v35, %s2209_s20  ;;  %1129 = vrot.lane.b32.xlu0 %v1121_v50, %s2209_s20  ;;  %v1128_v56 = vsel %vm863_vm8, %v1123_v13, %v1127_v16  ;;  %v1126_v25 = vsel %vm863_vm8, %v1120_v26, %v1125_v3 }
 0x609   :  { %1135 = vrot.lane.b32.xlu1 %v1128_v56, %s2209_s20  ;;  %1133 = vrot.lane.b32.xlu0 %v1126_v25, %s2209_s20 }
 0x60d   :  { %1175 = vrot.lane.b32.xlu0 %v2081_v45, %s2199_s9 }
 0x677   :  { %v1132_v19 = vpop.permute.xlu1 %1131  ;;  %v1130_v18 = vpop.permute.xlu0 %1129 }
 0x678   :  { %v1137_v55 = vsel %vm248_vm7, %v1130_v18, %v1132_v19 }
 0x679   :  { %v1141_v28 = vadd.f32 %v1137_v55, %v1096_v4  ;;  %v1162_v4 = vsel %vm1159_vm9, %v1160_v57, %v1161_v6  ;;  %v2085_v57 = vld [vmem:[#allocation5 + $0x25] ss:$0 sm:$0xff]  ;;  %v2096_v6 = vld [vmem:[#allocation5 + $0x32] ss:$0 sm:$0xff] }
 0x67b   :  { %v1136_v20 = vpop.permute.xlu1 %1135  ;;  %v1134_v40 = vpop.permute.xlu0 %1133  ;;  %v1167_v61 = vadd.f32 %v1162_v4, %v1141_v28 }
 0x67c   :  { %v1138_v53 = vsel %vm248_vm7, %v1134_v40, %v1136_v20  ;;  %v2083_v20 = vld [vmem:[#allocation5 + $0x23] ss:$0 sm:$0xff]  ;;  %v2084_v40 = vld [vmem:[#allocation5 + $0x24] ss:$0 sm:$0xff] }
 0x67d   :  { %v1142_v17 = vadd.f32 %v1138_v53, %v1097_v10  ;;  %v2086_v53 = vld [vmem:[#allocation5 + $0x26] ss:$0 sm:$0xff] }
 0x67f   :  { %v1176_v49 = vpop.permute.xlu0 %1175  ;;  %v1168_v9 = vadd.f32 %v1164_v14, %v1142_v17  ;;  %v2088_v17 = vld [vmem:[#allocation5 + $0x29] ss:$0 sm:$0xff]  ;;  %v2089_v14 = vld [vmem:[#allocation5 + $0x2a] ss:$0 sm:$0xff] }
 0x680   :  { %v1179_v15 = vmul.f32 %v1176_v49, %v2919_v27  ;;  %v1181_v46 = vmul.f32 %v3478_v62, %v1176_v49  ;;  %v1178_v31 = vmul.f32 %v1176_v49, %v2923_v22  ;;  %v1180_v24 = vmul.f32 %v2736_v38, %v1176_v49 }
 0x681   :  { %v1183_v54 = vmul.f32 %v1176_v49, %v2921_v52  ;;  %v1182_v43 = vmul.f32 %v1176_v49, %v2929_v32  ;;  %v2090_v49 = vld [vmem:[#allocation5 + $0x2b] ss:$0 sm:$0xff] }
 0x682   :  { %v1193_v41 = vrot.slane %v1179_v15, 4  ;;  %v1194_v44 = vrot.slane %v1181_v46, 4  ;;  %v1190_v29 = vrot.slane %v1178_v31, 4  ;;  %v1191_v30 = vrot.slane %v1180_v24, 4  ;;  %v2092_v15 = vld [vmem:[#allocation5 + $0x2d] ss:$0 sm:$0xff] }
 0x683   :  { %v1198_v36 = vrot.slane %v1183_v54, 4  ;;  %v1196_v39 = vrot.slane %v1182_v43, 4 }
 0x684   :  { %v1195_v33 = vsel %vm1159_vm9, %v1193_v41, %v1194_v44  ;;  %v1192_v34 = vsel %vm1159_vm9, %v1190_v29, %v1191_v30 }
 0x685   :  { %1202 = vrot.lane.b32.xlu0 %v1195_v33, %s2204_s15  ;;  %1200 = vrot.lane.b32.xlu1 %v1192_v34, %s2204_s15  ;;  %v1199_v47 = vsel %vm1159_vm9, %v1194_v44, %v1198_v36  ;;  %v1197_v48 = vsel %vm1159_vm9, %v1191_v30, %v1196_v39 }
 0x689   :  { %1206 = vrot.lane.b32.xlu0 %v1199_v47, %s2204_s15  ;;  %1204 = vrot.lane.b32.xlu1 %v1197_v48, %s2204_s15 }
 0x68d   :  { %1220 = vrot.lane.b32.xlu1 %v2082_v59, %s2196_s23 }
 0x6f7   :  { %v1203_v7 = vpop.permute.xlu0 %1202  ;;  %v1201_v42 = vpop.permute.xlu1 %1200 }
 0x6f8   :  { %v1208_v10 = vsel %vm88_vm2, %v1201_v42, %v1203_v7  ;;  %v2098_v7 = vld [vmem:[#allocation5 + $0x34] ss:$0 sm:$0xff] }
 0x6f9   :  { %v1212_v37 = vadd.f32 %v1208_v10, %v1167_v61 }
 0x6fb   :  { %v1207_v23 = vpop.permute.xlu0 %1206  ;;  %v1205_v0 = vpop.permute.xlu1 %1204 }
 0x6fc   :  { %v1209_v12 = vsel %vm88_vm2, %v1205_v0, %v1207_v23 }
 0x6fd   :  { %v1213_v63 = vadd.f32 %v1209_v12, %v1168_v9  ;;  %v2091_v12 = vld [vmem:[#allocation5 + $0x2c] ss:$0 sm:$0xff] }
 0x6ff   :  { %v1221_v2 = vpop.permute.xlu1 %1220 }
 0x700   :  { %v1224_v51 = vmul.f32 %v1221_v2, %v2919_v27  ;;  %v1226_v11 = vmul.f32 %v3478_v62, %v1221_v2  ;;  %v1223_v13 = vmul.f32 %v1221_v2, %v2923_v22  ;;  %v1225_v1 = vmul.f32 %v2736_v38, %v1221_v2 }
 0x701   :  { %v1228_v26 = vmul.f32 %v1221_v2, %v2921_v52  ;;  %v1227_v35 = vmul.f32 %v1221_v2, %v2929_v32 }
 0x702   :  { %v1238_v50 = vrot.slane %v1224_v51, 4  ;;  %v1239_v16 = vrot.slane %v1226_v11, 4  ;;  %v1235_v3 = vrot.slane %v1223_v13, 4  ;;  %v1236_v56 = vrot.slane %v1225_v1, 4  ;;  %v2093_v51 = vld [vmem:[#allocation5 + $0x2e] ss:$0 sm:$0xff] }
 0x703   :  { %v1243_v19 = vrot.slane %v1228_v26, 4  ;;  %v1241_v18 = vrot.slane %v1227_v35, 4  ;;  %v2095_v13 = vld [vmem:[#allocation5 + $0x31] ss:$0 sm:$0xff]  ;;  %v2097_v1 = vld [vmem:[#allocation5 + $0x33] ss:$0 sm:$0xff] }
 0x704   :  { %v1240_v25 = vsel %vm1159_vm9, %v1238_v50, %v1239_v16  ;;  %v1237_v45 = vsel %vm1159_vm9, %v1235_v3, %v1236_v56  ;;  %v2099_v35 = vld [vmem:[#allocation5 + $0x35] ss:$0 sm:$0xff] }
 0x705   :  { %1247 = vrot.lane.b32.xlu1 %v1240_v25, %s2205_s16  ;;  %1245 = vrot.lane.b32.xlu0 %v1237_v45, %s2205_s16  ;;  %v1244_v55 = vsel %vm1159_vm9, %v1239_v16, %v1243_v19  ;;  %v1242_v28 = vsel %vm1159_vm9, %v1236_v56, %v1241_v18 }
 0x709   :  { %1251 = vrot.lane.b32.xlu1 %v1244_v55, %s2205_s16  ;;  %1249 = vrot.lane.b32.xlu0 %v1242_v28, %s2205_s16 }
 0x70d   :  { %1265 = vrot.lane.b32.xlu0 %v2083_v20, %s2200_s12 }
 0x711   :  { %1310 = vrot.lane.b32.xlu0 %v2084_v40, %s2201_s13 }
 0x715   :  { %1400 = vrot.lane.b32.xlu0 %v2086_v53, %s2203_s14 }
 0x719   :  { %1471 = vrot.lane.b32.xlu0 %v2088_v17, %s2199_s9 }
 0x71d   :  { %1561 = vrot.lane.b32.xlu0 %v2090_v49, %s2200_s12 }
 0x721   :  { %1651 = vrot.lane.b32.xlu0 %v2092_v15, %s2202_s1 }
 0x777   :  { %v1248_v46 = vpop.permute.xlu1 %1247  ;;  %v1246_v31 = vpop.permute.xlu0 %1245 }
 0x778   :  { %v1253_v24 = vsel %vm120_vm3, %v1246_v31, %v1248_v46 }
 0x779   :  { %v2970_v54 = vadd.f32 %v1253_v24, %v1212_v37  ;;  %v2100_v37 = vld [vmem:[#allocation5 + $0x36] ss:$0 sm:$0xff] }
 0x77b   :  { %v1252_v43 = vpop.permute.xlu1 %1251  ;;  %v1250_v41 = vpop.permute.xlu0 %1249 }
 0x77c   :  { %v1254_v44 = vsel %vm120_vm3, %v1250_v41, %v1252_v43 }
 0x77d   :  { %v2973_v29 = vadd.f32 %v1254_v44, %v1213_v63 }
 0x77f   :  { %v1266_v30 = vpop.permute.xlu0 %1265 }
 0x780   :  { %v1270_v33 = vmul.f32 %v2736_v38, %v1266_v30  ;;  %v1272_v34 = vmul.f32 %v1266_v30, %v2929_v32  ;;  %v1268_v36 = vmul.f32 %v1266_v30, %v2923_v22  ;;  %v1269_v21 = vmul.f32 %v1266_v30, %v2919_v27 }
 0x781   :  { %v1271_v5 = vmul.f32 %v3478_v62, %v1266_v30  ;;  %v1273_v26 = vmul.f32 %v1266_v30, %v2921_v52 }
 0x782   :  { %v1281_v39 = vrot.slane %v1270_v33, 4  ;;  %v1286_v47 = vrot.slane %v1272_v34, 4  ;;  %v1280_v48 = vrot.slane %v1268_v36, 4  ;;  %v1283_v4 = vrot.slane %v1269_v21, 4 }
 0x783   :  { %v1311_v8 = vpop.permute.xlu0 %1310  ;;  %v1284_v58 = vrot.slane %v1271_v5, 4  ;;  %v1288_v3 = vrot.slane %v1273_v26, 4 }
 0x784   :  { %v1287_v59 = vsel %vm1159_vm9, %v1281_v39, %v1286_v47  ;;  %v1282_v60 = vsel %vm1159_vm9, %v1280_v48, %v1281_v39  ;;  %v1313_v42 = vmul.f32 %v1311_v8, %v2923_v22  ;;  %v1315_v61 = vmul.f32 %v2736_v38, %v1311_v8 }
 0x785   :  { %1294 = vrot.lane.b32.xlu0 %v1287_v59, %s2206_s17  ;;  %1290 = vrot.lane.b32.xlu1 %v1282_v60, %s2206_s17  ;;  %v1285_v10 = vsel %vm1159_vm9, %v1283_v4, %v1284_v58  ;;  %v1317_v9 = vmul.f32 %v1311_v8, %v2929_v32  ;;  %v1314_v50 = vmul.f32 %v1311_v8, %v2919_v27 }
 0x786   :  { %v1325_v23 = vrot.slane %v1313_v42, 4  ;;  %v1326_v0 = vrot.slane %v1315_v61, 4  ;;  %v1316_v16 = vmul.f32 %v3478_v62, %v1311_v8  ;;  %v1318_v45 = vmul.f32 %v1311_v8, %v2921_v52  ;;  %v3039_v61 = vld [vmem:[#allocation2] sm:$0xe0] }
 0x787   :  { %v1331_v2 = vrot.slane %v1317_v9, 4  ;;  %v1328_v56 = vrot.slane %v1314_v50, 4  ;;  %v1289_v19 = vsel %vm1159_vm9, %v1284_v58, %v1288_v3  ;;  %v1401_v20 = vpop.permute.xlu0 %1400  ;;  %v3065_v3 = vld [vmem:[#allocation2 + $0x20] sm:$0x1f] }
 0x788   :  { %v1327_v63 = vsel %vm1159_vm9, %v1325_v23, %v1326_v0  ;;  %v1329_v25 = vrot.slane %v1316_v16, 4  ;;  %v1333_v55 = vrot.slane %v1318_v45, 4  ;;  %v1404_v15 = vmul.f32 %v1401_v20, %v2919_v27 }
 0x789   :  { %1355 = vrot.lane.b32.xlu1 %v2085_v57, %s2202_s1  ;;  %1812 = vrot.lane.b32.xlu0 %v2096_v6, %s2196_s23  ;;  %v1332_v11 = vsel %vm1159_vm9, %v1326_v0, %v1331_v2  ;;  %v1406_v46 = vmul.f32 %v3478_v62, %v1401_v20  ;;  %v1403_v33 = vmul.f32 %v1401_v20, %v2923_v22 }
 0x78a   :  { %v1330_v18 = vsel %vm1159_vm9, %v1328_v56, %v1329_v25  ;;  %v1334_v28 = vsel %vm1159_vm9, %v1329_v25, %v1333_v55  ;;  %v1405_v34 = vmul.f32 %v2736_v38, %v1401_v20  ;;  %v1418_v4 = vrot.slane %v1404_v15, 4 }
 0x78b   :  { %v3013_v40 = vpop.permute.xlu0 %1471  ;;  %v1419_v58 = vrot.slane %v1406_v46, 4  ;;  %v1407_v23 = vmul.f32 %v1401_v20, %v2929_v32 }
 0x78c   :  { %v1416_v42 = vrot.slane %v1405_v34, 4  ;;  %v1477_v9 = vmul.f32 %v3478_v62, %v3013_v40  ;;  %v1478_v55 = vmul.f32 %v3013_v40, %v3065_v3 }
 0x78d   :  { %1292 = vrot.lane.b32.xlu1 %v1285_v10, %s2206_s17  ;;  %1902 = vrot.lane.b32.xlu0 %v2098_v7, %s2201_s13  ;;  %v1415_v7 = vrot.slane %v1403_v33, 4 }
 0x78f   :  { %v3015_v17 = vpop.permute.xlu0 %1561 }
 0x791   :  { %1516 = vrot.lane.b32.xlu1 %v2089_v14, %s2196_s23  ;;  %1992 = vrot.lane.b32.xlu0 %v2100_v37, %s2203_s14  ;;  %v1408_v14 = vmul.f32 %v1401_v20, %v2921_v52  ;;  %s2038_s23 = sshll.u32 %s2210_s2, 4  ;;  %s2039_s23 = int_to_ptr.vmem [resolvable:$true] %s2038_s23 }
 0x792   :  { %s2166_s24 = scalar_lea.vmem %s2039_s23, 256  ;;  %p2171_p3 = scmp.lt.s32.totalorder %s2039_s23, %s2039_s23 }
 0x793   :  { %v3030_v6 = vpop.permute.xlu0 %1651  ;;  %p2167_p2 = scmp.ne.s32.totalorder %s2039_s23, %s2166_s24  ;;  %p2172_p4 = scmp.lt.s32.totalorder %s2166_s24, %s2166_s24 }
 0x795   :  { %1606 = vrot.lane.b32.xlu1 %v2091_v12, %s2201_s13  ;;  %1335 = vrot.lane.b32.xlu0 %v1327_v63, %s2207_s18  ;;  %v1474_v12 = vmul.f32 %v3013_v40, %v3039_v61  ;;  %v1420_v63 = vsel %vm1159_vm9, %v1418_v4, %v1419_v58  ;;  %p2173_p5 = por %p2172_p4, %p2171_p3 }
 0x797   :  { %v1486_v50 = vrot.slane %v1474_v12, 5  ;;  %p2174_p6 = pnand %p2173_p5, %p2167_p2 }
 0x799   :  { %1696 = vrot.lane.b32.xlu1 %v2093_v51, %s2203_s14  ;;  %1339 = vrot.lane.b32.xlu0 %v1332_v11, %s2207_s18  ;;  %v1423_v11 = vrot.slane %v1408_v14, 4 }
 0x79d   :  { %1767 = vrot.lane.b32.xlu1 %v2095_v13, %s2199_s9  ;;  %v1421_v13 = vrot.slane %v1407_v23, 4 }
 0x7a1   :  { %1857 = vrot.lane.b32.xlu1 %v2097_v1, %s2200_s12  ;;  %v3061_v1 = vld [vmem:[#allocation2 + $0x28] sm:$0x1f] }
 0x7a2   :  { %v1479_v45 = vmul.f32 %v3013_v40, %v3061_v1 }
 0x7a5   :  { %1947 = vrot.lane.b32.xlu1 %v2099_v35, %s2202_s1  ;;  %v1490_v35 = vrot.slane %v1477_v9, 5  ;;  %v1568_v9 = vmul.f32 %v3015_v17, %v3065_v3 }
 0x7a9   :  { %1296 = vrot.lane.b32.xlu1 %v1289_v19, %s2206_s17  ;;  %v1424_v19 = vsel %vm1159_vm9, %v1419_v58, %v1423_v11 }
 0x7ad   :  { %1337 = vrot.lane.b32.xlu1 %v1330_v18, %s2207_s18  ;;  %v1422_v18 = vsel %vm1159_vm9, %v1416_v42, %v1421_v13 }
 0x7b1   :  { %1341 = vrot.lane.b32.xlu1 %v1334_v28, %s2207_s18 }
 0x7f7   :  { %v1291_v53 = vpop.permute.xlu1 %1290  ;;  %v3057_v2 = vpop.permute.xlu0 %1294 }
 0x7fb   :  { %v1356_v49 = vpop.permute.xlu1 %1355  ;;  %v3069_v25 = vpop.permute.xlu0 %1812 }
 0x7fc   :  { %v1359_v31 = vmul.f32 %v1356_v49, %v2919_v27  ;;  %v1361_v24 = vmul.f32 %v3478_v62, %v1356_v49  ;;  %v1358_v43 = vmul.f32 %v1356_v49, %v2923_v22  ;;  %v1360_v41 = vmul.f32 %v2736_v38, %v1356_v49  ;;  %v3037_v22 = vld [vmem:[#allocation2 + $0x8] sm:$0xe0] }
 0x7fd   :  { %v1363_v44 = vmul.f32 %v1356_v49, %v2921_v52  ;;  %v1362_v30 = vmul.f32 %v1356_v49, %v2929_v32  ;;  %v1475_v0 = vmul.f32 %v3013_v40, %v3037_v22  ;;  %v1476_v52 = vmul.f32 %v2736_v38, %v3013_v40 }
 0x7fe   :  { %v1373_v36 = vrot.slane %v1359_v31, 4  ;;  %v1374_v39 = vrot.slane %v1361_v24, 4  ;;  %v1370_v47 = vrot.slane %v1358_v43, 4  ;;  %v1371_v48 = vrot.slane %v1360_v41, 4 }
 0x7ff   :  { %v1293_v59 = vpop.permute.xlu1 %1292  ;;  %v1378_v27 = vrot.slane %v1363_v44, 4  ;;  %v1376_v57 = vrot.slane %v1362_v30, 4  ;;  %v1417_v32 = vsel %vm1159_vm9, %v1415_v7, %v1416_v42  ;;  %v1489_v26 = vrot.slane %v1475_v0, 5  ;;  %v3089_v43 = vpop.permute.xlu0 %1902 }
 0x800   :  { %v1298_v60 = vsel %vm152_vm4, %v1291_v53, %v1293_v59  ;;  %v1375_v21 = vsel %vm1159_vm9, %v1373_v36, %v1374_v39  ;;  %v1372_v5 = vsel %vm1159_vm9, %v1370_v47, %v1371_v48  ;;  %v1487_v16 = vrot.slane %v1476_v52, 5 }
 0x801   :  { %v3033_v8 = vadd.f32 %v1298_v60, %v2970_v54  ;;  %1382 = vrot.lane.b32.xlu1 %v1375_v21, %s2208_s19  ;;  %1380 = vrot.lane.b32.xlu0 %v1372_v5, %s2208_s19  ;;  %v1379_v37 = vsel %vm1159_vm9, %v1374_v39, %v1378_v27  ;;  %v1377_v54 = vsel %vm1159_vm9, %v1371_v48, %v1376_v57  ;;  %v1494_v24 = vrot.slane %v1479_v45, 5 }
 0x802   :  { %v1491_v28 = vsel %vm1455_vm10, %v1489_v26, %v1490_v35  ;;  %v1488_v20 = vsel %vm1455_vm10, %v1486_v50, %v1487_v16  ;;  %v1492_v40 = vrot.slane %v1478_v55, 5  ;;  %v1565_v59 = vmul.f32 %v3015_v17, %v3037_v22 }
 0x803   :  { %v1517_v10 = vpop.permute.xlu1 %1516  ;;  %v1495_v36 = vsel %vm1455_vm10, %v1490_v35, %v1494_v24  ;;  %v1567_v27 = vmul.f32 %v3478_v62, %v3015_v17  ;;  %v1564_v60 = vmul.f32 %v3015_v17, %v3039_v61  ;;  %v1566_v21 = vmul.f32 %v2736_v38, %v3015_v17  ;;  %v3111_v58 = vpop.permute.xlu0 %1992 }
 0x804   :  { %v1520_v53 = vmul.f32 %v1517_v10, %v3037_v22  ;;  %v1522_v49 = vmul.f32 %v3478_v62, %v1517_v10  ;;  %v1519_v15 = vmul.f32 %v1517_v10, %v3039_v61  ;;  %v1521_v46 = vmul.f32 %v2736_v38, %v1517_v10 }
 0x805   :  { %1386 = vrot.lane.b32.xlu1 %v1379_v37, %s2208_s19  ;;  %1384 = vrot.lane.b32.xlu0 %v1377_v54, %s2208_s19  ;;  %v1493_v39 = vsel %vm1455_vm10, %v1487_v16, %v1492_v40  ;;  %v1524_v47 = vmul.f32 %v1517_v10, %v3061_v1  ;;  %v1523_v48 = vmul.f32 %v1517_v10, %v3065_v3  ;;  %v1579_v10 = vrot.slane %v1565_v59, 5 }
 0x806   :  { %v1534_v41 = vrot.slane %v1520_v53, 5  ;;  %v1535_v44 = vrot.slane %v1522_v49, 5  ;;  %v1531_v30 = vrot.slane %v1519_v15, 5  ;;  %v1532_v33 = vrot.slane %v1521_v46, 5 }
 0x807   :  { %v3059_v51 = vpop.permute.xlu1 %1606  ;;  %v1539_v7 = vrot.slane %v1524_v47, 5  ;;  %v1537_v42 = vrot.slane %v1523_v48, 5  ;;  %v1580_v14 = vrot.slane %v1567_v27, 5  ;;  %v1576_v37 = vrot.slane %v1564_v60, 5  ;;  %v1336_v11 = vpop.permute.xlu0 %1335  ;;  %v3164_v27 = vld [vmem:[#allocation2] sm:$0xc0] }
 0x808   :  { %v1536_v5 = vsel %vm1455_vm10, %v1534_v41, %v1535_v44  ;;  %v1533_v57 = vsel %vm1455_vm10, %v1531_v30, %v1532_v33  ;;  %v1577_v54 = vrot.slane %v1566_v21, 5  ;;  %v1569_v0 = vmul.f32 %v3015_v17, %v3061_v1  ;;  %v2094_v60 = vld [vmem:[#allocation5 + $0x30] ss:$0 sm:$0xff] }
 0x809   :  { %1427 = vrot.lane.b32.xlu1 %v1420_v63, %s2209_s20  ;;  %1425 = vrot.lane.b32.xlu0 %v1417_v32, %s2209_s20  ;;  %v1540_v52 = vsel %vm1455_vm10, %v1535_v44, %v1539_v7  ;;  %v1538_v63 = vsel %vm1455_vm10, %v1532_v33, %v1537_v42  ;;  %v1581_v13 = vsel %vm1455_vm10, %v1579_v10, %v1580_v14  ;;  %v1582_v45 = vrot.slane %v1568_v9, 5 }
 0x80a   :  { %v1578_v26 = vsel %vm1455_vm10, %v1576_v37, %v1577_v54  ;;  %v1610_v17 = vmul.f32 %v3059_v51, %v3037_v22  ;;  %v1609_v35 = vmul.f32 %v3059_v51, %v3039_v61  ;;  %v1584_v16 = vrot.slane %v1569_v0, 5 }
 0x80b   :  { %v3067_v56 = vpop.permute.xlu1 %1696  ;;  %v1583_v15 = vsel %vm1455_vm10, %v1577_v54, %v1582_v45  ;;  %v1614_v46 = vmul.f32 %v3059_v51, %v3061_v1  ;;  %v1613_v24 = vmul.f32 %v3059_v51, %v3065_v3  ;;  %v1657_v40 = vmul.f32 %v3478_v62, %v3030_v6 }
 0x80c   :  { %v1624_v55 = vrot.slane %v1610_v17, 5  ;;  %v1585_v49 = vsel %vm1455_vm10, %v1580_v14, %v1584_v16  ;;  %v1654_v41 = vmul.f32 %v3030_v6, %v3039_v61  ;;  %v1656_v44 = vmul.f32 %v2736_v38, %v3030_v6 }
 0x80d   :  { %1431 = vrot.lane.b32.xlu1 %v1424_v19, %s2209_s20  ;;  %1429 = vrot.lane.b32.xlu0 %v1422_v18, %s2209_s20  ;;  %v1629_v33 = vrot.slane %v1614_v46, 5  ;;  %v1670_v47 = vrot.slane %v1657_v40, 5  ;;  %v1659_v21 = vmul.f32 %v3030_v6, %v3061_v1  ;;  %v1658_v14 = vmul.f32 %v3030_v6, %v3065_v3 }
 0x80e   :  { %v1666_v48 = vrot.slane %v1654_v41, 5  ;;  %v1667_v59 = vrot.slane %v1656_v44, 5  ;;  %v1700_v0 = vmul.f32 %v3067_v56, %v3037_v22  ;;  %v1702_v9 = vmul.f32 %v3478_v62, %v3067_v56 }
 0x80f   :  { %v3085_v31 = vpop.permute.xlu1 %1767  ;;  %v1704_v45 = vmul.f32 %v3067_v56, %v3061_v1 }
 0x810   :  { %v1668_v37 = vsel %vm1455_vm10, %v1666_v48, %v1667_v59  ;;  %v1715_v17 = vrot.slane %v1702_v9, 5  ;;  %v1770_v1 = vmul.f32 %v3085_v31, %v3164_v27 }
 0x811   :  { %1498 = vrot.lane.b32.xlu1 %v1491_v28, %s2204_s15  ;;  %1496 = vrot.lane.b32.xlu0 %v1488_v20, %s2204_s15  ;;  %v1621_v20 = vrot.slane %v1609_v35, 5  ;;  %v1719_v46 = vrot.slane %v1704_v45, 5 }
 0x812   :  { %v1782_v44 = vrot.slane %v1770_v1, 6  ;;  %v1905_v1 = vmul.f32 %v3089_v43, %v3164_v27 }
 0x813   :  { %v3091_v34 = vpop.permute.xlu1 %1857 }
 0x815   :  { %1502 = vrot.lane.b32.xlu1 %v1495_v36, %s2204_s15  ;;  %1500 = vrot.lane.b32.xlu0 %v1493_v39, %s2204_s15  ;;  %v1627_v36 = vrot.slane %v1613_v24, 5 }
 0x817   :  { %v3109_v4 = vpop.permute.xlu1 %1947 }
 0x819   :  { %1543 = vrot.lane.b32.xlu1 %v1536_v5, %s2205_s16  ;;  %1541 = vrot.lane.b32.xlu0 %v1533_v57, %s2205_s16  ;;  %v1745_v5 = vmul.f32 %v2094_v60, %v3164_v27  ;;  %v1746_v57 = vmul.f32 %v2736_v38, %v2094_v60 }
 0x81b   :  { %v1297_v23 = vpop.permute.xlu1 %1296  ;;  %v1752_v54 = vrot.slane %v1745_v5, 6 }
 0x81c   :  { %v1299_v12 = vsel %vm152_vm4, %v3057_v2, %v1297_v23  ;;  %v1612_v2 = vmul.f32 %v3478_v62, %v3059_v51  ;;  %v1753_v23 = vrot.slane %v1746_v57, 6 }
 0x81d   :  { %v3124_v32 = vadd.f32 %v1299_v12, %v2973_v29  ;;  %1547 = vrot.lane.b32.xlu1 %v1540_v52, %s2205_s16  ;;  %1545 = vrot.lane.b32.xlu0 %v1538_v63, %s2205_s16  ;;  %v1611_v29 = vmul.f32 %v2736_v38, %v3059_v51  ;;  %v1699_v12 = vmul.f32 %v3067_v56, %v3039_v61  ;;  %v3186_v52 = vld [vmem:[#allocation2 + $0x20] sm:$0x3f] }
 0x81e   :  { %v1625_v28 = vrot.slane %v1612_v2, 5  ;;  %v3189_v63 = vsel %vm1751_vm11, %v1752_v54, %v1753_v23 }
 0x81f   :  { %v1338_v50 = vpop.permute.xlu1 %1337  ;;  %v1622_v53 = vrot.slane %v1611_v29, 5  ;;  %v1711_v2 = vrot.slane %v1699_v12, 5  ;;  %v3194_v29 = vld [vmem:[#allocation2 + $0x8] sm:$0xc0] }
 0x820   :  { %v1343_v19 = vsel %vm184_vm5, %v1336_v11, %v1338_v50  ;;  %v1626_v30 = vsel %vm1455_vm10, %v1624_v55, %v1625_v28  ;;  %v1630_v7 = vsel %vm1455_vm10, %v1625_v28, %v1629_v33  ;;  %v1747_v11 = vmul.f32 %v2094_v60, %v3186_v52  ;;  %v3209_v28 = vld [vmem:[#allocation2 + $0x18] sm:$0xff] }
 0x821   :  { %v3140_v18 = vadd.f32 %v1343_v19, %v3033_v8  ;;  %1588 = vrot.lane.b32.xlu1 %v1581_v13, %s2206_s17  ;;  %1586 = vrot.lane.b32.xlu0 %v1578_v26, %s2206_s17  ;;  %v1655_v8 = vmul.f32 %v3030_v6, %v3037_v22  ;;  %v1623_v51 = vsel %vm1455_vm10, %v1621_v20, %v1622_v53  ;;  %v1674_v13 = vrot.slane %v1659_v21, 5 }
 0x822   :  { %v1628_v42 = vsel %vm1455_vm10, %v1622_v53, %v1627_v36  ;;  %v1701_v6 = vmul.f32 %v2736_v38, %v3067_v56  ;;  %v1672_v26 = vrot.slane %v1658_v14, 5  ;;  %v1755_v62 = vrot.slane %v1747_v11, 6 }
 0x823   :  { %v1669_v39 = vrot.slane %v1655_v8, 5  ;;  %v1714_v22 = vrot.slane %v1700_v0, 5  ;;  %v1675_v50 = vsel %vm1455_vm10, %v1670_v47, %v1674_v13  ;;  %v1703_v19 = vmul.f32 %v3067_v56, %v3065_v3  ;;  %v3217_v56 = vld [vmem:[#allocation2 + $0x10] sm:$0xff]  ;;  %v3223_v8 = vld [vmem:[#allocation2 + $0x28] sm:$0x3f] }
 0x824   :  { %v1712_v35 = vrot.slane %v1701_v6, 5  ;;  %v3197_v38 = vsel %vm1751_vm11, %v1753_v23, %v1755_v62  ;;  %v1673_v16 = vsel %vm1455_vm10, %v1667_v59, %v1672_v26  ;;  %v1771_v55 = vmul.f32 %v3085_v31, %v3194_v29 }
 0x825   :  { %1592 = vrot.lane.b32.xlu1 %v1585_v49, %s2206_s17  ;;  %1590 = vrot.lane.b32.xlu0 %v1583_v15, %s2206_s17  ;;  %v1671_v10 = vsel %vm1455_vm10, %v1669_v39, %v1670_v47  ;;  %v1773_v20 = vmul.f32 %v3209_v28, %v3085_v31  ;;  %v1716_v53 = vsel %vm1455_vm10, %v1714_v22, %v1715_v17  ;;  %v1717_v24 = vrot.slane %v1703_v19, 5 }
 0x826   :  { %v1713_v49 = vsel %vm1455_vm10, %v1711_v2, %v1712_v35  ;;  %v1772_v15 = vmul.f32 %v3217_v56, %v3085_v31  ;;  %v1785_v40 = vrot.slane %v1771_v55, 6  ;;  %v1720_v33 = vsel %vm1455_vm10, %v1715_v17, %v1719_v46 }
 0x827   :  { %v1786_v41 = vrot.slane %v1773_v20, 6  ;;  %v1718_v36 = vsel %vm1455_vm10, %v1712_v35, %v1717_v24  ;;  %v1775_v39 = vmul.f32 %v3085_v31, %v3223_v8  ;;  %v1774_v47 = vmul.f32 %v3085_v31, %v3186_v52 }
 0x828   :  { %v1818_v48 = vmul.f32 %v3209_v28, %v3069_v25  ;;  %v1815_v59 = vmul.f32 %v3069_v25, %v3164_v27  ;;  %v1817_v60 = vmul.f32 %v3217_v56, %v3069_v25  ;;  %v1820_v23 = vmul.f32 %v3069_v25, %v3223_v8 }
 0x829   :  { %1633 = vrot.lane.b32.xlu1 %v1626_v30, %s2207_s18  ;;  %1631 = vrot.lane.b32.xlu0 %v1623_v51, %s2207_s18  ;;  %v1783_v30 = vrot.slane %v1772_v15, 6  ;;  %v1816_v51 = vmul.f32 %v3069_v25, %v3194_v29  ;;  %v1787_v21 = vsel %vm1751_vm11, %v1785_v40, %v1786_v41  ;;  %v1790_v57 = vrot.slane %v1775_v39, 6 }
 0x82a   :  { %v1828_v14 = vrot.slane %v1817_v60, 6  ;;  %v1819_v0 = vmul.f32 %v3069_v25, %v3186_v52  ;;  %v1861_v6 = vmul.f32 %v3091_v34, %v3194_v29  ;;  %v1863_v11 = vmul.f32 %v3209_v28, %v3091_v34 }
 0x82b   :  { %v1784_v5 = vsel %vm1751_vm11, %v1782_v44, %v1783_v30  ;;  %v1830_v31 = vrot.slane %v1816_v51, 6  ;;  %v1860_v13 = vmul.f32 %v3091_v34, %v3164_v27  ;;  %v1862_v25 = vmul.f32 %v3217_v56, %v3091_v34 }
 0x82c   :  { %v1835_v26 = vrot.slane %v1820_v23, 6  ;;  %v1833_v62 = vrot.slane %v1819_v0, 6  ;;  %v1875_v22 = vrot.slane %v1861_v6, 6  ;;  %v1876_v17 = vrot.slane %v1863_v11, 6 }
 0x82d   :  { %1637 = vrot.lane.b32.xlu1 %v1630_v7, %s2207_s18  ;;  %1635 = vrot.lane.b32.xlu0 %v1628_v42, %s2207_s18  ;;  %v1788_v7 = vrot.slane %v1774_v47, 6  ;;  %v1831_v42 = vrot.slane %v1818_v48, 6  ;;  %v1872_v2 = vrot.slane %v1860_v13, 6  ;;  %v1873_v35 = vrot.slane %v1862_v25, 6 }
 0x82e   :  { %v1865_v45 = vmul.f32 %v3091_v34, %v3223_v8  ;;  %v1864_v19 = vmul.f32 %v3091_v34, %v3186_v52  ;;  %v1906_v55 = vmul.f32 %v3089_v43, %v3194_v29  ;;  %v1908_v20 = vmul.f32 %v3209_v28, %v3089_v43 }
 0x82f   :  { %v1789_v54 = vsel %vm1751_vm11, %v1783_v30, %v1788_v7  ;;  %v1832_v9 = vsel %vm1751_vm11, %v1830_v31, %v1831_v42  ;;  %v1907_v34 = vmul.f32 %v3217_v56, %v3089_v43  ;;  %v1951_v47 = vmul.f32 %v3109_v4, %v3194_v29 }
 0x830   :  { %v1880_v15 = vrot.slane %v1865_v45, 6  ;;  %v1878_v46 = vrot.slane %v1864_v19, 6  ;;  %v1920_v24 = vrot.slane %v1906_v55, 6  ;;  %v1921_v40 = vrot.slane %v1908_v20, 6 }
 0x831   :  { %1678 = vrot.lane.b32.xlu1 %v1671_v10, %s2208_s19  ;;  %1676 = vrot.lane.b32.xlu0 %v1668_v37, %s2208_s19  ;;  %v1827_v10 = vrot.slane %v1815_v59, 6  ;;  %v1791_v37 = vsel %vm1751_vm11, %v1786_v41, %v1790_v57  ;;  %v1917_v41 = vrot.slane %v1905_v1, 6  ;;  %v1918_v44 = vrot.slane %v1907_v34, 6  ;;  %v2087_v1 = vld [vmem:[#allocation5 + $0x28] ss:$0 sm:$0xff] }
 0x832   :  { %v1881_v30 = vsel %vm1751_vm11, %v1876_v17, %v1880_v15  ;;  %v1879_v51 = vsel %vm1751_vm11, %v1873_v35, %v1878_v46  ;;  %v1922_v39 = vsel %vm1751_vm11, %v1920_v24, %v1921_v40  ;;  %v1953_v59 = vmul.f32 %v3209_v28, %v3109_v4 }
 0x833   :  { %v1829_v12 = vsel %vm1751_vm11, %v1827_v10, %v1828_v14  ;;  %v1919_v48 = vsel %vm1751_vm11, %v1917_v41, %v1918_v44  ;;  %v1950_v60 = vmul.f32 %v3109_v4, %v3164_v27  ;;  %v1965_v57 = vrot.slane %v1951_v47, 6 }
 0x834   :  { %v1966_v7 = vrot.slane %v1953_v59, 6  ;;  %v1996_v23 = vmul.f32 %v3111_v58, %v3194_v29  ;;  %v1998_v0 = vmul.f32 %v3209_v28, %v3111_v58  ;;  %v1995_v6 = vmul.f32 %v3111_v58, %v3164_v27 }
 0x835   :  { %1682 = vrot.lane.b32.xlu1 %v1675_v50, %s2208_s19  ;;  %1680 = vrot.lane.b32.xlu0 %v1673_v16, %s2208_s19  ;;  %v1836_v50 = vsel %vm1751_vm11, %v1831_v42, %v1835_v26  ;;  %v1834_v16 = vsel %vm1751_vm11, %v1828_v14, %v1833_v62  ;;  %v1962_v31 = vrot.slane %v1950_v60, 6  ;;  %v2000_v27 = vmul.f32 %v3111_v58, %v3223_v8 }
 0x836   :  { %v2010_v29 = vrot.slane %v1996_v23, 6  ;;  %v2011_v25 = vrot.slane %v1998_v0, 6  ;;  %v2007_v26 = vrot.slane %v1995_v6, 6  ;;  %v1450_v41 = vmul.f32 %v3217_v56, %v2087_v1 }
 0x839   :  { %1723 = vrot.lane.b32.xlu1 %v1716_v53, %s2209_s20  ;;  %1721 = vrot.lane.b32.xlu0 %v1713_v49, %s2209_s20  ;;  %v1877_v53 = vsel %vm1751_vm11, %v1875_v22, %v1876_v17  ;;  %v1874_v49 = vsel %vm1751_vm11, %v1872_v2, %v1873_v35  ;;  %v1999_v17 = vmul.f32 %v3111_v58, %v3186_v52 }
 0x83a   :  { %v2012_v2 = vsel %vm1751_vm11, %v2010_v29, %v2011_v25 }
 0x83d   :  { %1727 = vrot.lane.b32.xlu1 %v1720_v33, %s2209_s20  ;;  %1725 = vrot.lane.b32.xlu0 %v1718_v36, %s2209_s20  ;;  %v1910_v33 = vmul.f32 %v3089_v43, %v3223_v8  ;;  %v1909_v36 = vmul.f32 %v3089_v43, %v3186_v52  ;;  %v1952_v43 = vmul.f32 %v3217_v56, %v3109_v4 }
 0x83f   :  { %v1963_v42 = vrot.slane %v1952_v43, 6 }
 0x841   :  { %1794 = vrot.lane.b32.xlu1 %v1787_v21, %s2204_s15  ;;  %1792 = vrot.lane.b32.xlu0 %v1784_v5, %s2204_s15  ;;  %v1925_v21 = vrot.slane %v1910_v33, 6  ;;  %v1923_v5 = vrot.slane %v1909_v36, 6 }
 0x843   :  { %v1926_v10 = vsel %vm1751_vm11, %v1921_v40, %v1925_v21  ;;  %v1924_v14 = vsel %vm1751_vm11, %v1918_v44, %v1923_v5  ;;  %v1449_v40 = vmul.f32 %v2087_v1, %v3039_v61 }
 0x845   :  { %1798 = vrot.lane.b32.xlu1 %v1791_v37, %s2204_s15  ;;  %1796 = vrot.lane.b32.xlu0 %v1789_v54, %s2204_s15  ;;  %v1955_v37 = vmul.f32 %v3109_v4, %v3223_v8  ;;  %v1954_v54 = vmul.f32 %v3109_v4, %v3186_v52  ;;  %v1997_v4 = vmul.f32 %v3217_v56, %v3111_v58  ;;  %v1342_v58 = vpop.permute.xlu1 %1341  ;;  %v1340_v52 = vpop.permute.xlu0 %1339  ;;  %v1456_v36 = vrot.slane %v1449_v40, 5 }
 0x846   :  { %v1344_v20 = vsel %vm184_vm5, %v1340_v52, %v1342_v58 }
 0x847   :  { %v1970_v11 = vrot.slane %v1955_v37, 6  ;;  %v1968_v13 = vrot.slane %v1954_v54, 6  ;;  %v2008_v28 = vrot.slane %v1997_v4, 6  ;;  %v1348_v34 = vadd.f32 %v1344_v20, %v3124_v32 }
 0x849   :  { %1839 = vrot.lane.b32.xlu1 %v1832_v9, %s2205_s16  ;;  %1837 = vrot.lane.b32.xlu0 %v1829_v12, %s2205_s16  ;;  %v1967_v9 = vsel %vm1751_vm11, %v1965_v57, %v1966_v7  ;;  %v1964_v12 = vsel %vm1751_vm11, %v1962_v31, %v1963_v42  ;;  %v1971_v62 = vsel %vm1751_vm11, %v1966_v7, %v1970_v11 }
 0x84a   :  { %v1969_v22 = vsel %vm1751_vm11, %v1963_v42, %v1968_v13  ;;  %v2009_v35 = vsel %vm1751_vm11, %v2007_v26, %v2008_v28 }
 0x84d   :  { %1843 = vrot.lane.b32.xlu1 %v1836_v50, %s2205_s16  ;;  %1841 = vrot.lane.b32.xlu0 %v1834_v16, %s2205_s16  ;;  %v2015_v50 = vrot.slane %v2000_v27, 6  ;;  %v2013_v16 = vrot.slane %v1999_v17, 6 }
 0x84f   :  { %v2016_v45 = vsel %vm1751_vm11, %v2011_v25, %v2015_v50  ;;  %v2014_v8 = vsel %vm1751_vm11, %v2008_v28, %v2013_v16 }
 0x851   :  { %1884 = vrot.lane.b32.xlu1 %v1877_v53, %s2206_s17  ;;  %1882 = vrot.lane.b32.xlu0 %v1874_v49, %s2206_s17 }
 0x855   :  { %1888 = vrot.lane.b32.xlu1 %v1881_v30, %s2206_s17  ;;  %1886 = vrot.lane.b32.xlu0 %v1879_v51, %s2206_s17 }
 0x859   :  { %1929 = vrot.lane.b32.xlu1 %v1922_v39, %s2207_s18  ;;  %1927 = vrot.lane.b32.xlu0 %v1919_v48, %s2207_s18  ;;  %v1457_v39 = vrot.slane %v1450_v41, 5 }
 0x85b   :  { %v1458_v60 = vsel %vm1455_vm10, %v1456_v36, %v1457_v39 }
 0x85d   :  { %1933 = vrot.lane.b32.xlu1 %v1926_v10, %s2207_s18  ;;  %1931 = vrot.lane.b32.xlu0 %v1924_v14, %s2207_s18 }
 0x861   :  { %1974 = vrot.lane.b32.xlu1 %v1967_v9, %s2208_s19  ;;  %1972 = vrot.lane.b32.xlu0 %v1964_v12, %s2208_s19 }
 0x865   :  { %1978 = vrot.lane.b32.xlu1 %v1971_v62, %s2208_s19  ;;  %1976 = vrot.lane.b32.xlu0 %v1969_v22, %s2208_s19 }
 0x869   :  { %2019 = vrot.lane.b32.xlu1 %v2012_v2, %s2209_s20  ;;  %2017 = vrot.lane.b32.xlu0 %v2009_v35, %s2209_s20 }
 0x86d   :  { %2023 = vrot.lane.b32.xlu1 %v2016_v45, %s2209_s20  ;;  %2021 = vrot.lane.b32.xlu0 %v2014_v8, %s2209_s20 }
 0x873   :  { %v1383_v19 = vpop.permute.xlu1 %1382  ;;  %v1381_v55 = vpop.permute.xlu0 %1380 }
 0x874   :  { %v1388_v53 = vsel %vm216_vm6, %v1381_v55, %v1383_v19 }
 0x875   :  { %v1392_v49 = vadd.f32 %v1388_v53, %v3140_v18  ;;  %v1451_v18 = vmul.f32 %v2087_v1, %v3065_v3 }
 0x877   :  { %v1387_v15 = vpop.permute.xlu1 %1386  ;;  %v1385_v46 = vpop.permute.xlu0 %1384  ;;  %v1459_v43 = vrot.slane %v1451_v18, 5 }
 0x878   :  { %v1389_v24 = vsel %vm216_vm6, %v1385_v46, %v1387_v15 }
 0x879   :  { %v1393_v44 = vadd.f32 %v1389_v24, %v1348_v34  ;;  %v1460_v7 = vsel %vm1455_vm10, %v1457_v39, %v1459_v43 }
 0x87b   :  { %v1428_v30 = vpop.permute.xlu1 %1427  ;;  %v1426_v51 = vpop.permute.xlu0 %1425 }
 0x87c   :  { %v1433_v33 = vsel %vm248_vm7, %v1426_v51, %v1428_v30 }
 0x87d   :  { %v1437_v47 = vadd.f32 %v1433_v33, %v1392_v49 }
 0x87f   :  { %v1432_v48 = vpop.permute.xlu1 %1431  ;;  %v1430_v32 = vpop.permute.xlu0 %1429  ;;  %v1463_v5 = vadd.f32 %v1458_v60, %v1437_v47 }
 0x880   :  { %v1434_v59 = vsel %vm248_vm7, %v1430_v32, %v1432_v48 }
 0x881   :  { %v1438_v61 = vadd.f32 %v1434_v59, %v1393_v44 }
 0x883   :  { %v1499_v21 = vpop.permute.xlu1 %1498  ;;  %v1497_v56 = vpop.permute.xlu0 %1496  ;;  %v1464_v3 = vadd.f32 %v1460_v7, %v1438_v61 }
 0x884   :  { %v1504_v57 = vsel %vm88_vm2, %v1497_v56, %v1499_v21 }
 0x885   :  { %v1508_v31 = vadd.f32 %v1504_v57, %v1463_v5 }
 0x887   :  { %v1503_v42 = vpop.permute.xlu1 %1502  ;;  %v1501_v10 = vpop.permute.xlu0 %1500 }
 0x888   :  { %v1505_v14 = vsel %vm88_vm2, %v1501_v10, %v1503_v42 }
 0x889   :  { %v1509_v37 = vadd.f32 %v1505_v14, %v1464_v3 }
 0x88b   :  { %v1544_v54 = vpop.permute.xlu1 %1543  ;;  %v1542_v23 = vpop.permute.xlu0 %1541 }
 0x88c   :  { %v1549_v28 = vsel %vm120_vm3, %v1542_v23, %v1544_v54 }
 0x88d   :  { %v1553_v17 = vadd.f32 %v1549_v28, %v1508_v31 }
 0x88f   :  { %v1548_v0 = vpop.permute.xlu1 %1547  ;;  %v1546_v9 = vpop.permute.xlu0 %1545 }
 0x890   :  { %v1550_v2 = vsel %vm120_vm3, %v1546_v9, %v1548_v0 }
 0x891   :  { %v1554_v52 = vadd.f32 %v1550_v2, %v1509_v37 }
 0x893   :  { %v1589_v12 = vpop.permute.xlu1 %1588  ;;  %v1587_v6 = vpop.permute.xlu0 %1586 }
 0x894   :  { %v1594_v27 = vsel %vm152_vm4, %v1587_v6, %v1589_v12 }
 0x895   :  { %v1598_v50 = vadd.f32 %v1594_v27, %v1553_v17 }
 0x897   :  { %v1593_v4 = vpop.permute.xlu1 %1592  ;;  %v1591_v11 = vpop.permute.xlu0 %1590 }
 0x898   :  { %v1595_v8 = vsel %vm152_vm4, %v1591_v11, %v1593_v4 }
 0x899   :  { %v1599_v20 = vadd.f32 %v1595_v8, %v1554_v52 }
 0x89b   :  { %v1634_v13 = vpop.permute.xlu1 %1633  ;;  %v1632_v29 = vpop.permute.xlu0 %1631 }
 0x89c   :  { %v1639_v35 = vsel %vm184_vm5, %v1632_v29, %v1634_v13 }
 0x89d   :  { %v1643_v19 = vadd.f32 %v1639_v35, %v1598_v50 }
 0x89f   :  { %v1638_v25 = vpop.permute.xlu1 %1637  ;;  %v1636_v26 = vpop.permute.xlu0 %1635 }
 0x8a0   :  { %v1640_v55 = vsel %vm184_vm5, %v1636_v26, %v1638_v25 }
 0x8a1   :  { %v1644_v46 = vadd.f32 %v1640_v55, %v1599_v20 }
 0x8a3   :  { %v1679_v62 = vpop.permute.xlu1 %1678  ;;  %v1677_v22 = vpop.permute.xlu0 %1676 }
 0x8a4   :  { %v1684_v58 = vsel %vm216_vm6, %v1677_v22, %v1679_v62 }
 0x8a5   :  { %v1688_v53 = vadd.f32 %v1684_v58, %v1643_v19 }
 0x8a7   :  { %v1683_v16 = vpop.permute.xlu1 %1682  ;;  %v1681_v45 = vpop.permute.xlu0 %1680 }
 0x8a8   :  { %v1685_v34 = vsel %vm216_vm6, %v1681_v45, %v1683_v16 }
 0x8a9   :  { %v1689_v40 = vadd.f32 %v1685_v34, %v1644_v46 }
 0x8ab   :  { %v1724_v49 = vpop.permute.xlu1 %1723  ;;  %v1722_v1 = vpop.permute.xlu0 %1721 }
 0x8ac   :  { %v1729_v15 = vsel %vm248_vm7, %v1722_v1, %v1724_v49 }
 0x8ad   :  { %v1733_v24 = vadd.f32 %v1729_v15, %v1688_v53 }
 0x8af   :  { %v1728_v41 = vpop.permute.xlu1 %1727  ;;  %v1726_v44 = vpop.permute.xlu0 %1725  ;;  %v1759_v30 = vadd.f32 %v3189_v63, %v1733_v24 }
 0x8b0   :  { %v1730_v51 = vsel %vm248_vm7, %v1726_v44, %v1728_v41 }
 0x8b1   :  { %v1734_v33 = vadd.f32 %v1730_v51, %v1689_v40 }
 0x8b3   :  { %v1795_v36 = vpop.permute.xlu1 %1794  ;;  %v1793_v39 = vpop.permute.xlu0 %1792  ;;  %v1760_v18 = vadd.f32 %v3197_v38, %v1734_v33 }
 0x8b4   :  { %v1800_v42 = vsel %vm88_vm2, %v1793_v39, %v1795_v36 }
 0x8b5   :  { %v1804_v3 = vadd.f32 %v1800_v42, %v1759_v30 }
 0x8b7   :  { %v1799_v47 = vpop.permute.xlu1 %1798  ;;  %v1797_v48 = vpop.permute.xlu0 %1796 }
 0x8b8   :  { %v1801_v37 = vsel %vm88_vm2, %v1797_v48, %v1799_v47 }
 0x8b9   :  { %v1805_v12 = vadd.f32 %v1801_v37, %v1760_v18 }
 0x8bb   :  { %v1840_v32 = vpop.permute.xlu1 %1839  ;;  %v1838_v59 = vpop.permute.xlu0 %1837 }
 0x8bc   :  { %v1845_v10 = vsel %vm120_vm3, %v1838_v59, %v1840_v32 }
 0x8bd   :  { %v1849_v23 = vadd.f32 %v1845_v10, %v1804_v3 }
 0x8bf   :  { %v1844_v60 = vpop.permute.xlu1 %1843  ;;  %v1842_v43 = vpop.permute.xlu0 %1841 }
 0x8c0   :  { %v1846_v0 = vsel %vm120_vm3, %v1842_v43, %v1844_v60 }
 0x8c1   :  { %v1850_v25 = vadd.f32 %v1846_v0, %v1805_v12 }
 0x8c3   :  { %v1885_v61 = vpop.permute.xlu1 %1884  ;;  %v1883_v21 = vpop.permute.xlu0 %1882 }
 0x8c4   :  { %v1890_v54 = vsel %vm152_vm4, %v1883_v21, %v1885_v61 }
 0x8c5   :  { %v1894_v6 = vadd.f32 %v1890_v54, %v1849_v23 }
 0x8c7   :  { %v1889_v56 = vpop.permute.xlu1 %1888  ;;  %v1887_v5 = vpop.permute.xlu0 %1886 }
 0x8c8   :  { %v1891_v13 = vsel %vm152_vm4, %v1887_v5, %v1889_v56 }
 0x8c9   :  { %v1895_v62 = vadd.f32 %v1891_v13, %v1850_v25 }
 0x8cb   :  { %v1930_v57 = vpop.permute.xlu1 %1929  ;;  %v1928_v7 = vpop.permute.xlu0 %1927 }
 0x8cc   :  { %v1935_v9 = vsel %vm184_vm5, %v1928_v7, %v1930_v57 }
 0x8cd   :  { %v1939_v26 = vadd.f32 %v1935_v9, %v1894_v6 }
 0x8cf   :  { %v1934_v63 = vpop.permute.xlu1 %1933  ;;  %v1932_v31 = vpop.permute.xlu0 %1931 }
 0x8d0   :  { %v1936_v28 = vsel %vm184_vm5, %v1932_v31, %v1934_v63 }
 0x8d1   :  { %v1940_v50 = vadd.f32 %v1936_v28, %v1895_v62 }
 0x8d3   :  { %v1975_v38 = vpop.permute.xlu1 %1974  ;;  %v1973_v14 = vpop.permute.xlu0 %1972 }
 0x8d4   :  { %v1980_v29 = vsel %vm216_vm6, %v1973_v14, %v1975_v38 }
 0x8d5   :  { %v1984_v22 = vadd.f32 %v1980_v29, %v1939_v26 }
 0x8d7   :  { %v1979_v4 = vpop.permute.xlu1 %1978  ;;  %v1977_v11 = vpop.permute.xlu0 %1976 }
 0x8d8   :  { %v1981_v2 = vsel %vm216_vm6, %v1977_v11, %v1979_v4 }
 0x8d9   :  { %v1985_v45 = vadd.f32 %v1981_v2, %v1940_v50 }
 0x8db   :  { %v2020_v27 = vpop.permute.xlu1 %2019  ;;  %v2018_v17 = vpop.permute.xlu0 %2017 }
 0x8dc   :  { %v2025_v35 = vsel %vm248_vm7, %v2018_v17, %v2020_v27 }
 0x8dd   :  { %v2029_v16 = vadd.f32 %v2025_v35, %v1984_v22 }
 0x8df   :  { %2031 = vst [vmem:[#allocation7] sm:$0xff] %v2029_v16  ;;  %v2024_v8 = vpop.permute.xlu1 %2023  ;;  %v2022_v58 = vpop.permute.xlu0 %2021 }
 0x8e0   :  { %v2026_v52 = vsel %vm248_vm7, %v2022_v58, %v2024_v8 }
 0x8e1   :  { %v2030_v19 = vadd.f32 %v2026_v52, %v1985_v45 }
 0x8e3   :  { %2032 = vst [vmem:[#allocation7 + $0x8] sm:$0xff] %v2030_v19 }
 0x8e4   :  { %2177 = shalt.err (!%p2174_p6)
}
 0x8e5   :  { %s2178_s27 = scalar_lea.hbm %s3397_s3, 256 }
 0x8e6   :  { %p2179_p7 = scmp.ne.s32.totalorder %s3397_s3, %s2178_s27  ;;  %p2182_p8 = scmp.lt.u32.totalorder %s2178_s27, %s3397_s3 }
 0x8e8   :  { %p2184_p9 = pnand %p2182_p8, %p2179_p7 }
 0x8ea   :  { %2187 = shalt.err (!%p2184_p9)
}
 0x8eb   :  { %2044 = dma.vmem_to_hbm [thread:$0]  %s2039_s23, 256, %s3397_s3, [#allocation4], %s2198_s0, %s2198_s0, %s2199_s9  }
 0x8ec   :  { %2192 = dma.done.wait [#allocation4], 256  }
 0x8ed   :  { %2193 = vsyncadd [#allocation4], 4294967040 }
 0x8ee   :  { %2048 = vsyncpa [#allocation3], 1 }
 0x8ef   :  { %2049 = vsyncpa [#allocation6], 1 }
 0x8f0   :  { %2050 = vsyncpa [#allocation4], 1 }

</bundles_post_ra>
